<compile_context>
chip_gen: v7x
topology: tpu7x:2x2x1
jax: 0.10.0
libtpu: 0.0.40
codegen_flags: <defaults>
</compile_context>

<pallas_src>
import math

import jax
import jax.numpy as jnp
import numpy as np
from jax import lax
from jax.experimental import pallas as pl
from jax.experimental.pallas import tpu as pltpu


def _round_up(a, b):
    return (a + b - 1) // b * b


# ----------------------------------------------------------------------------
# Fused forward kernel
# ----------------------------------------------------------------------------
def _lenet_kernel(x_ref, m1_ref, b1_ref, m2_ref, b2_ref,
                  wf1_ref, bf1_ref, wf2_ref, bf2_ref, wout_ref, bout_ref,
                  out_ref, p1_scr):
    tb = x_ref.shape[1]
    f32, bf16 = jnp.float32, jnp.bfloat16

    # ---- conv1 (5x5, 1->6), width-pool folded into the tap weights ----------
    # rows = (h=24, b=tb) h-major; lanes = [even w-pooled 72 | pad | odd 72]
    def x_tap(ki):
        return x_ref[ki:ki + 24].reshape(24 * tb, 28).astype(bf16)

    a1 = jnp.dot(x_tap(0), m1_ref[0], preferred_element_type=f32)
    for ki in range(1, 5):
        a1 = a1 + jnp.dot(x_tap(ki), m1_ref[ki], preferred_element_type=f32)
    # even/odd width pair-max via vreg-aligned half slices, then bias + relu
    aw1 = jnp.maximum(jnp.maximum(a1[:, :72], a1[:, 128:200]) + b1_ref[...], 0.0)

    # ---- height pool #1: pair-max of adjacent tb-row blocks -> VMEM scratch -
    for i in range(12):
        p1_scr[i] = jnp.maximum(aw1[(2 * i) * tb:(2 * i + 1) * tb],
                                aw1[(2 * i + 1) * tb:(2 * i + 2) * tb])

    # ---- conv2 (5x5, 6->12), width-pool folded into the tap weights ---------
    # rows = (h2=8, b=tb) h-major; lanes = [even 48 | pad | odd 48]
    def p_tap(ki):
        return p1_scr[ki:ki + 8].reshape(8 * tb, 72).astype(bf16)

    a2 = jnp.dot(p_tap(0), m2_ref[0], preferred_element_type=f32)
    for ki in range(1, 5):
        a2 = a2 + jnp.dot(p_tap(ki), m2_ref[ki], preferred_element_type=f32)
    aw2 = jnp.maximum(jnp.maximum(a2[:, :48], a2[:, 128:176]) + b2_ref[...], 0.0)

    # ---- height pool #2 fused with fc1 (channel-major flatten folded in) ----
    acc = None
    for i2 in range(4):
        p2 = jnp.maximum(aw2[(2 * i2) * tb:(2 * i2 + 1) * tb],
                         aw2[(2 * i2 + 1) * tb:(2 * i2 + 2) * tb]).astype(bf16)
        t = jnp.dot(p2, wf1_ref[i2], preferred_element_type=f32)
        acc = t if acc is None else acc + t
    h1 = jnp.maximum(acc + bf1_ref[...], 0.0)                      # (tb, 128)

    # ---- fc2 + out (all widths padded to 128 lanes, lane-dense store) -------
    h2 = jnp.maximum(jnp.dot(h1.astype(bf16), wf2_ref[...],
                             preferred_element_type=f32) + bf2_ref[...], 0.0)
    logits = jnp.dot(h2.astype(bf16), wout_ref[...],
                     preferred_element_type=f32) + bout_ref[...]
    out_ref[...] = logits.astype(out_ref.dtype)


# ----------------------------------------------------------------------------
# One-time parameter preparation (tiny, static shapes; jit-traceable)
# ----------------------------------------------------------------------------
def _prep_params(params):
    f32, bf16 = jnp.float32, jnp.bfloat16

    # conv1 tap matrices with the 2x2 width-pool selection folded in.
    # Output lane layout: even cols (j=2u) -> lane u*6+c, odd -> lane 128+u*6+c.
    w1 = params["w_conv1"][:, 0].astype(f32)                        # (6, 5, 5)
    ki, kj, j, c = np.meshgrid(np.arange(5), np.arange(5),
                               np.arange(24), np.arange(6), indexing="ij")
    col1 = (j // 2) * 6 + c + 128 * (j % 2)
    m1p = jnp.zeros((5, 28, 200), f32).at[ki, j + kj, col1].set(w1[c, ki, kj])
    b1 = jnp.tile(params["b_conv1"].astype(f32), 12).reshape(1, 72)

    # conv2 tap matrices, same trick: even (j2=2v) -> v*12+d, odd -> 128+v*12+d.
    w2 = params["w_conv2"].astype(f32)                              # (12, 6, 5, 5)
    ki, kj, j2, c, d = np.meshgrid(np.arange(5), np.arange(5), np.arange(8),
                                   np.arange(6), np.arange(12), indexing="ij")
    col2 = (j2 // 2) * 12 + d + 128 * (j2 % 2)
    m2p = jnp.zeros((5, 72, 176), f32).at[ki, (j2 + kj) * 6 + c, col2].set(
        w2[d, c, ki, kj])
    b2 = jnp.tile(params["b_conv2"].astype(f32), 4).reshape(1, 48)

    # fc1: fold the PyTorch channel-major flatten (d*16 + i2*4 + v) into the
    # weight and split by pooled-H index i2.  Pad 120 -> 128 lanes.
    wf1 = params["w_fc1"].astype(f32).reshape(120, 12, 4, 4)        # (o, d, i2, v)
    wf1 = wf1.transpose(2, 3, 1, 0).reshape(4, 48, 120)             # (i2, v*12+d, o)
    wf1 = jnp.pad(wf1, ((0, 0), (0, 0), (0, 8)))
    bf1 = jnp.pad(params["b_fc1"].astype(f32), (0, 8)).reshape(1, 128)

    wf2 = jnp.pad(params["w_fc2"].astype(f32).T, ((0, 8), (0, 68)))     # (128,128)
    bf2 = jnp.pad(params["b_fc2"].astype(f32), (0, 68)).reshape(1, 128)
    wout = jnp.pad(params["w_out"].astype(f32).T, ((0, 68), (0, 118)))  # (128,128)
    bout = jnp.pad(params["b_out"].astype(f32), (0, 118)).reshape(1, 128)

    # bf16 matmul weights (MXU-native on v6e/v7x); biases stay f32.
    return (m1p.astype(bf16), b1, m2p.astype(bf16), b2,
            wf1.astype(bf16), bf1, wf2.astype(bf16), bf2,
            wout.astype(bf16), bout)


# ----------------------------------------------------------------------------
# Wrapper
# ----------------------------------------------------------------------------
def network_forward(x, params, *, batch_tile=None):
    """x: (N, 1, 28, 28) float32 NCHW -> logits (N, 10)."""
    N = x.shape[0]
    x = x.reshape(N, 28, 28).astype(jnp.float32)

    if batch_tile is None:
        # v7x has 2 TensorCores: keep >=2 grid steps for small/medium batches.
        batch_tile = 64 if N <= 256 else 128
    tb = _round_up(int(min(batch_tile, _round_up(max(N, 1), 8))), 8)
    n_pad = _round_up(N, tb)
    if n_pad != N:
        x = jnp.pad(x, ((0, n_pad - N), (0, 0), (0, 0)))
    x = jnp.transpose(x, (1, 0, 2))            # h-major layout: (28, n_pad, 28)

    weights = _prep_params(params)

    def rep(w):
        nd = w.ndim
        return pl.BlockSpec(w.shape, lambda i, _nd=nd: (0,) * _nd)

    out = pl.pallas_call(
        _lenet_kernel,
        out_shape=jax.ShapeDtypeStruct((n_pad, 128), jnp.float32),
        grid=(n_pad // tb,),
        in_specs=[pl.BlockSpec((28, tb, 28), lambda i: (0, i, 0))]
                 + [rep(w) for w in weights],
        out_specs=pl.BlockSpec((tb, 128), lambda i: (i, 0)),
        scratch_shapes=[pltpu.VMEM((12, tb, 72), jnp.float32)],
        compiler_params=pltpu.CompilerParams(
            dimension_semantics=("parallel",),
            vmem_limit_bytes=32 * 1024 * 1024),
    )(x, *weights)

    return out[:N, :10]


# ----------------------------------------------------------------------------
# Parameter init (PyTorch-style uniform) and pure-JAX reference
# ----------------------------------------------------------------------------
def init_params(key):
    def uniform(k, shape, fan_in):
        bound = 1.0 / math.sqrt(fan_in)
        return jax.random.uniform(k, shape, jnp.float32, -bound, bound)

    ks = jax.random.split(key, 10)
    return {
        "w_conv1": uniform(ks[0], (6, 1, 5, 5), 25),
        "b_conv1": uniform(ks[1], (6,), 25),
        "w_conv2": uniform(ks[2], (12, 6, 5, 5), 150),
        "b_conv2": uniform(ks[3], (12,), 150),
        "w_fc1": uniform(ks[4], (120, 192), 192),   # PyTorch Linear: (out, in)
        "b_fc1": uniform(ks[5], (120,), 192),
        "w_fc2": uniform(ks[6], (60, 120), 120),
        "b_fc2": uniform(ks[7], (60,), 120),
        "w_out": uniform(ks[8], (10, 60), 60),
        "b_out": uniform(ks[9], (10,), 60),
    }


def reference_forward(x, params):
    dn = ("NCHW", "OIHW", "NCHW")
    hp = lax.Precision.HIGHEST
    y = lax.conv_general_dilated(x, params["w_conv1"], (1, 1), "VALID",
                                 dimension_numbers=dn, precision=hp)
    y = jnp.maximum(y + params["b_conv1"][None, :, None, None], 0.0)
    y = lax.reduce_window(y, -jnp.inf, lax.max, (1, 1, 2, 2), (1, 1, 2, 2), "VALID")
    y = lax.conv_general_dilated(y, params["w_conv2"], (1, 1), "VALID",
                                 dimension_numbers=dn, precision=hp)
    y = jnp.maximum(y + params["b_conv2"][None, :, None, None], 0.0)
    y = lax.reduce_window(y, -jnp.inf, lax.max, (1, 1, 2, 2), (1, 1, 2, 2), "VALID")
    y = y.reshape(y.shape[0], -1)
    y = jnp.maximum(jnp.dot(y, params["w_fc1"].T, precision=hp) + params["b_fc1"], 0.0)
    y = jnp.maximum(jnp.dot(y, params["w_fc2"].T, precision=hp) + params["b_fc2"], 0.0)
    return jnp.dot(y, params["w_out"].T, precision=hp) + params["b_out"]


if __name__ == "__main__":
    key = jax.random.PRNGKey(0)
    kx, kp = jax.random.split(key)
    x = jax.random.normal(kx, (2, 1, 28, 28), dtype=jnp.float32)
    params = init_params(kp)

    fwd = jax.jit(network_forward)
    out = jax.block_until_ready(fwd(x, params))
    assert out.shape == (2, 10)

    ref = reference_forward(x, params)
    np.testing.assert_allclose(np.asarray(out), np.asarray(ref), rtol=5e-2, atol=5e-2)

    print("KERNEL_OK")
</pallas_src>

<mosaic_0001>
module attributes {stable_mosaic.version = 11 : i64} {
  func.func @_lenet_kernel(%arg0: i32, %arg1: memref<28x8x28xf32, #tpu.memory_space<vmem>>, %arg2: memref<5x28x200xbf16, #tpu.memory_space<vmem>>, %arg3: memref<1x72xf32, #tpu.memory_space<vmem>>, %arg4: memref<5x72x176xbf16, #tpu.memory_space<vmem>>, %arg5: memref<1x48xf32, #tpu.memory_space<vmem>>, %arg6: memref<4x48x128xbf16, #tpu.memory_space<vmem>>, %arg7: memref<1x128xf32, #tpu.memory_space<vmem>>, %arg8: memref<128x128xbf16, #tpu.memory_space<vmem>>, %arg9: memref<1x128xf32, #tpu.memory_space<vmem>>, %arg10: memref<128x128xbf16, #tpu.memory_space<vmem>>, %arg11: memref<1x128xf32, #tpu.memory_space<vmem>>, %arg12: memref<8x128xf32, #tpu.memory_space<vmem>>, %arg13: memref<12x8x72xf32, #tpu.memory_space<vmem>>) attributes {dimension_semantics = [#tpu.dimension_semantics<parallel>], iteration_bounds = array<i64: 1>, scalar_prefetch = 0 : i64, scratch_operands = 1 : i64, tpu.core_type = #tpu.core_type<tc>, window_params = [{transform_indices = @transform_0, window_bounds = array<i64: 28, 8, 28>}, {pipeline_mode = #tpu.pipeline_mode<synchronous>, transform_indices = @transform_1, window_bounds = array<i64: 5, 28, 200>}, {pipeline_mode = #tpu.pipeline_mode<synchronous>, transform_indices = @transform_2, window_bounds = array<i64: 1, 72>}, {pipeline_mode = #tpu.pipeline_mode<synchronous>, transform_indices = @transform_3, window_bounds = array<i64: 5, 72, 176>}, {pipeline_mode = #tpu.pipeline_mode<synchronous>, transform_indices = @transform_4, window_bounds = array<i64: 1, 48>}, {pipeline_mode = #tpu.pipeline_mode<synchronous>, transform_indices = @transform_5, window_bounds = array<i64: 4, 48, 128>}, {pipeline_mode = #tpu.pipeline_mode<synchronous>, transform_indices = @transform_6, window_bounds = array<i64: 1, 128>}, {pipeline_mode = #tpu.pipeline_mode<synchronous>, transform_indices = @transform_7, window_bounds = array<i64: 128, 128>}, {pipeline_mode = #tpu.pipeline_mode<synchronous>, transform_indices = @transform_8, window_bounds = array<i64: 1, 128>}, {pipeline_mode = #tpu.pipeline_mode<synchronous>, transform_indices = @transform_9, window_bounds = array<i64: 128, 128>}, {pipeline_mode = #tpu.pipeline_mode<synchronous>, transform_indices = @transform_10, window_bounds = array<i64: 1, 128>}, {transform_indices = @transform_11, window_bounds = array<i64: 8, 128>}]} {
    %c0 = arith.constant 0 : index
    %c0_0 = arith.constant 0 : index
    %c0_1 = arith.constant 0 : index
    %0 = vector.load %arg1[%c0, %c0_0, %c0_1] : memref<28x8x28xf32, #tpu.memory_space<vmem>>, vector<24x8x28xf32>
    %1 = vector.shape_cast %0 : vector<24x8x28xf32> to vector<192x28xf32>
    %2 = arith.truncf %1 : vector<192x28xf32> to vector<192x28xbf16>
    %c0_2 = arith.constant 0 : index
    %c0_3 = arith.constant 0 : index
    %c0_4 = arith.constant 0 : index
    %3 = vector.load %arg2[%c0_2, %c0_3, %c0_4] : memref<5x28x200xbf16, #tpu.memory_space<vmem>>, vector<1x28x200xbf16>
    %4 = vector.shape_cast %3 : vector<1x28x200xbf16> to vector<28x200xbf16>
    %cst = arith.constant dense<0.000000e+00> : vector<192x200xf32>
    %5 = tpu.matmul %2, %4, %cst {dimension_numbers = #tpu.dot_dimension_numbers<[1], [0], [0], [1], [0, 0, 1, 1], [], []>} : vector<192x28xbf16>, vector<28x200xbf16>, vector<192x200xf32> -> vector<192x200xf32>
    %c1 = arith.constant 1 : index
    %c0_5 = arith.constant 0 : index
    %c0_6 = arith.constant 0 : index
    %6 = vector.load %arg1[%c1, %c0_5, %c0_6] : memref<28x8x28xf32, #tpu.memory_space<vmem>>, vector<24x8x28xf32>
    %7 = vector.shape_cast %6 : vector<24x8x28xf32> to vector<192x28xf32>
    %8 = arith.truncf %7 : vector<192x28xf32> to vector<192x28xbf16>
    %c1_7 = arith.constant 1 : index
    %c0_8 = arith.constant 0 : index
    %c0_9 = arith.constant 0 : index
    %9 = vector.load %arg2[%c1_7, %c0_8, %c0_9] : memref<5x28x200xbf16, #tpu.memory_space<vmem>>, vector<1x28x200xbf16>
    %10 = vector.shape_cast %9 : vector<1x28x200xbf16> to vector<28x200xbf16>
    %cst_10 = arith.constant dense<0.000000e+00> : vector<192x200xf32>
    %11 = tpu.matmul %8, %10, %cst_10 {dimension_numbers = #tpu.dot_dimension_numbers<[1], [0], [0], [1], [0, 0, 1, 1], [], []>} : vector<192x28xbf16>, vector<28x200xbf16>, vector<192x200xf32> -> vector<192x200xf32>
    %12 = arith.addf %5, %11 : vector<192x200xf32>
    %c2 = arith.constant 2 : index
    %c0_11 = arith.constant 0 : index
    %c0_12 = arith.constant 0 : index
    %13 = vector.load %arg1[%c2, %c0_11, %c0_12] : memref<28x8x28xf32, #tpu.memory_space<vmem>>, vector<24x8x28xf32>
    %14 = vector.shape_cast %13 : vector<24x8x28xf32> to vector<192x28xf32>
    %15 = arith.truncf %14 : vector<192x28xf32> to vector<192x28xbf16>
    %c2_13 = arith.constant 2 : index
    %c0_14 = arith.constant 0 : index
    %c0_15 = arith.constant 0 : index
    %16 = vector.load %arg2[%c2_13, %c0_14, %c0_15] : memref<5x28x200xbf16, #tpu.memory_space<vmem>>, vector<1x28x200xbf16>
    %17 = vector.shape_cast %16 : vector<1x28x200xbf16> to vector<28x200xbf16>
    %cst_16 = arith.constant dense<0.000000e+00> : vector<192x200xf32>
    %18 = tpu.matmul %15, %17, %cst_16 {dimension_numbers = #tpu.dot_dimension_numbers<[1], [0], [0], [1], [0, 0, 1, 1], [], []>} : vector<192x28xbf16>, vector<28x200xbf16>, vector<192x200xf32> -> vector<192x200xf32>
    %19 = arith.addf %12, %18 : vector<192x200xf32>
    %c3 = arith.constant 3 : index
    %c0_17 = arith.constant 0 : index
    %c0_18 = arith.constant 0 : index
    %20 = vector.load %arg1[%c3, %c0_17, %c0_18] : memref<28x8x28xf32, #tpu.memory_space<vmem>>, vector<24x8x28xf32>
    %21 = vector.shape_cast %20 : vector<24x8x28xf32> to vector<192x28xf32>
    %22 = arith.truncf %21 : vector<192x28xf32> to vector<192x28xbf16>
    %c3_19 = arith.constant 3 : index
    %c0_20 = arith.constant 0 : index
    %c0_21 = arith.constant 0 : index
    %23 = vector.load %arg2[%c3_19, %c0_20, %c0_21] : memref<5x28x200xbf16, #tpu.memory_space<vmem>>, vector<1x28x200xbf16>
    %24 = vector.shape_cast %23 : vector<1x28x200xbf16> to vector<28x200xbf16>
    %cst_22 = arith.constant dense<0.000000e+00> : vector<192x200xf32>
    %25 = tpu.matmul %22, %24, %cst_22 {dimension_numbers = #tpu.dot_dimension_numbers<[1], [0], [0], [1], [0, 0, 1, 1], [], []>} : vector<192x28xbf16>, vector<28x200xbf16>, vector<192x200xf32> -> vector<192x200xf32>
    %26 = arith.addf %19, %25 : vector<192x200xf32>
    %c4 = arith.constant 4 : index
    %c0_23 = arith.constant 0 : index
    %c0_24 = arith.constant 0 : index
    %27 = vector.load %arg1[%c4, %c0_23, %c0_24] : memref<28x8x28xf32, #tpu.memory_space<vmem>>, vector<24x8x28xf32>
    %28 = vector.shape_cast %27 : vector<24x8x28xf32> to vector<192x28xf32>
    %29 = arith.truncf %28 : vector<192x28xf32> to vector<192x28xbf16>
    %c4_25 = arith.constant 4 : index
    %c0_26 = arith.constant 0 : index
    %c0_27 = arith.constant 0 : index
    %30 = vector.load %arg2[%c4_25, %c0_26, %c0_27] : memref<5x28x200xbf16, #tpu.memory_space<vmem>>, vector<1x28x200xbf16>
    %31 = vector.shape_cast %30 : vector<1x28x200xbf16> to vector<28x200xbf16>
    %cst_28 = arith.constant dense<0.000000e+00> : vector<192x200xf32>
    %32 = tpu.matmul %29, %31, %cst_28 {dimension_numbers = #tpu.dot_dimension_numbers<[1], [0], [0], [1], [0, 0, 1, 1], [], []>} : vector<192x28xbf16>, vector<28x200xbf16>, vector<192x200xf32> -> vector<192x200xf32>
    %33 = arith.addf %26, %32 : vector<192x200xf32>
    %34 = vector.extract_strided_slice %33 {offsets = [0, 0], sizes = [192, 72], strides = [1, 1]} : vector<192x200xf32> to vector<192x72xf32>
    %35 = vector.extract_strided_slice %33 {offsets = [0, 128], sizes = [192, 72], strides = [1, 1]} : vector<192x200xf32> to vector<192x72xf32>
    %36 = arith.maximumf %34, %35 : vector<192x72xf32>
    %c0_29 = arith.constant 0 : index
    %c0_30 = arith.constant 0 : index
    %37 = vector.load %arg3[%c0_29, %c0_30] : memref<1x72xf32, #tpu.memory_space<vmem>>, vector<1x72xf32>
    %38 = vector.broadcast %37 : vector<1x72xf32> to vector<192x72xf32>
    %39 = arith.addf %36, %38 : vector<192x72xf32>
    %cst_31 = arith.constant 0.000000e+00 : f32
    %40 = vector.broadcast %cst_31 : f32 to vector<192x72xf32>
    %41 = arith.maximumf %39, %40 : vector<192x72xf32>
    %42 = vector.extract_strided_slice %41 {offsets = [0, 0], sizes = [8, 72], strides = [1, 1]} : vector<192x72xf32> to vector<8x72xf32>
    %43 = vector.extract_strided_slice %41 {offsets = [8, 0], sizes = [8, 72], strides = [1, 1]} : vector<192x72xf32> to vector<8x72xf32>
    %44 = arith.maximumf %42, %43 : vector<8x72xf32>
    %c0_32 = arith.constant 0 : index
    %c0_33 = arith.constant 0 : index
    %c0_34 = arith.constant 0 : index
    %45 = vector.load %arg13[%c0_32, %c0_33, %c0_34] : memref<12x8x72xf32, #tpu.memory_space<vmem>>, vector<1x8x72xf32>
    %46 = vector.shape_cast %45 : vector<1x8x72xf32> to vector<8x72xf32>
    %47 = vector.shape_cast %44 : vector<8x72xf32> to vector<1x8x72xf32>
    tpu.vector_store %arg13[%c0_32, %c0_33, %c0_34], %47 {strides = array<i32>} : memref<12x8x72xf32, #tpu.memory_space<vmem>>, vector<1x8x72xf32>,
    %48 = vector.extract_strided_slice %41 {offsets = [16, 0], sizes = [8, 72], strides = [1, 1]} : vector<192x72xf32> to vector<8x72xf32>
    %49 = vector.extract_strided_slice %41 {offsets = [24, 0], sizes = [8, 72], strides = [1, 1]} : vector<192x72xf32> to vector<8x72xf32>
    %50 = arith.maximumf %48, %49 : vector<8x72xf32>
    %c1_35 = arith.constant 1 : index
    %c0_36 = arith.constant 0 : index
    %c0_37 = arith.constant 0 : index
    %51 = vector.load %arg13[%c1_35, %c0_36, %c0_37] : memref<12x8x72xf32, #tpu.memory_space<vmem>>, vector<1x8x72xf32>
    %52 = vector.shape_cast %51 : vector<1x8x72xf32> to vector<8x72xf32>
    %53 = vector.shape_cast %50 : vector<8x72xf32> to vector<1x8x72xf32>
    tpu.vector_store %arg13[%c1_35, %c0_36, %c0_37], %53 {strides = array<i32>} : memref<12x8x72xf32, #tpu.memory_space<vmem>>, vector<1x8x72xf32>,
    %54 = vector.extract_strided_slice %41 {offsets = [32, 0], sizes = [8, 72], strides = [1, 1]} : vector<192x72xf32> to vector<8x72xf32>
    %55 = vector.extract_strided_slice %41 {offsets = [40, 0], sizes = [8, 72], strides = [1, 1]} : vector<192x72xf32> to vector<8x72xf32>
    %56 = arith.maximumf %54, %55 : vector<8x72xf32>
    %c2_38 = arith.constant 2 : index
    %c0_39 = arith.constant 0 : index
    %c0_40 = arith.constant 0 : index
    %57 = vector.load %arg13[%c2_38, %c0_39, %c0_40] : memref<12x8x72xf32, #tpu.memory_space<vmem>>, vector<1x8x72xf32>
    %58 = vector.shape_cast %57 : vector<1x8x72xf32> to vector<8x72xf32>
    %59 = vector.shape_cast %56 : vector<8x72xf32> to vector<1x8x72xf32>
    tpu.vector_store %arg13[%c2_38, %c0_39, %c0_40], %59 {strides = array<i32>} : memref<12x8x72xf32, #tpu.memory_space<vmem>>, vector<1x8x72xf32>,
    %60 = vector.extract_strided_slice %41 {offsets = [48, 0], sizes = [8, 72], strides = [1, 1]} : vector<192x72xf32> to vector<8x72xf32>
    %61 = vector.extract_strided_slice %41 {offsets = [56, 0], sizes = [8, 72], strides = [1, 1]} : vector<192x72xf32> to vector<8x72xf32>
    %62 = arith.maximumf %60, %61 : vector<8x72xf32>
    %c3_41 = arith.constant 3 : index
    %c0_42 = arith.constant 0 : index
    %c0_43 = arith.constant 0 : index
    %63 = vector.load %arg13[%c3_41, %c0_42, %c0_43] : memref<12x8x72xf32, #tpu.memory_space<vmem>>, vector<1x8x72xf32>
    %64 = vector.shape_cast %63 : vector<1x8x72xf32> to vector<8x72xf32>
    %65 = vector.shape_cast %62 : vector<8x72xf32> to vector<1x8x72xf32>
    tpu.vector_store %arg13[%c3_41, %c0_42, %c0_43], %65 {strides = array<i32>} : memref<12x8x72xf32, #tpu.memory_space<vmem>>, vector<1x8x72xf32>,
    %66 = vector.extract_strided_slice %41 {offsets = [64, 0], sizes = [8, 72], strides = [1, 1]} : vector<192x72xf32> to vector<8x72xf32>
    %67 = vector.extract_strided_slice %41 {offsets = [72, 0], sizes = [8, 72], strides = [1, 1]} : vector<192x72xf32> to vector<8x72xf32>
    %68 = arith.maximumf %66, %67 : vector<8x72xf32>
    %c4_44 = arith.constant 4 : index
    %c0_45 = arith.constant 0 : index
    %c0_46 = arith.constant 0 : index
    %69 = vector.load %arg13[%c4_44, %c0_45, %c0_46] : memref<12x8x72xf32, #tpu.memory_space<vmem>>, vector<1x8x72xf32>
    %70 = vector.shape_cast %69 : vector<1x8x72xf32> to vector<8x72xf32>
    %71 = vector.shape_cast %68 : vector<8x72xf32> to vector<1x8x72xf32>
    tpu.vector_store %arg13[%c4_44, %c0_45, %c0_46], %71 {strides = array<i32>} : memref<12x8x72xf32, #tpu.memory_space<vmem>>, vector<1x8x72xf32>,
    %72 = vector.extract_strided_slice %41 {offsets = [80, 0], sizes = [8, 72], strides = [1, 1]} : vector<192x72xf32> to vector<8x72xf32>
    %73 = vector.extract_strided_slice %41 {offsets = [88, 0], sizes = [8, 72], strides = [1, 1]} : vector<192x72xf32> to vector<8x72xf32>
    %74 = arith.maximumf %72, %73 : vector<8x72xf32>
    %c5 = arith.constant 5 : index
    %c0_47 = arith.constant 0 : index
    %c0_48 = arith.constant 0 : index
    %75 = vector.load %arg13[%c5, %c0_47, %c0_48] : memref<12x8x72xf32, #tpu.memory_space<vmem>>, vector<1x8x72xf32>
    %76 = vector.shape_cast %75 : vector<1x8x72xf32> to vector<8x72xf32>
    %77 = vector.shape_cast %74 : vector<8x72xf32> to vector<1x8x72xf32>
    tpu.vector_store %arg13[%c5, %c0_47, %c0_48], %77 {strides = array<i32>} : memref<12x8x72xf32, #tpu.memory_space<vmem>>, vector<1x8x72xf32>,
    %78 = vector.extract_strided_slice %41 {offsets = [96, 0], sizes = [8, 72], strides = [1, 1]} : vector<192x72xf32> to vector<8x72xf32>
    %79 = vector.extract_strided_slice %41 {offsets = [104, 0], sizes = [8, 72], strides = [1, 1]} : vector<192x72xf32> to vector<8x72xf32>
    %80 = arith.maximumf %78, %79 : vector<8x72xf32>
    %c6 = arith.constant 6 : index
    %c0_49 = arith.constant 0 : index
    %c0_50 = arith.constant 0 : index
    %81 = vector.load %arg13[%c6, %c0_49, %c0_50] : memref<12x8x72xf32, #tpu.memory_space<vmem>>, vector<1x8x72xf32>
    %82 = vector.shape_cast %81 : vector<1x8x72xf32> to vector<8x72xf32>
    %83 = vector.shape_cast %80 : vector<8x72xf32> to vector<1x8x72xf32>
    tpu.vector_store %arg13[%c6, %c0_49, %c0_50], %83 {strides = array<i32>} : memref<12x8x72xf32, #tpu.memory_space<vmem>>, vector<1x8x72xf32>,
    %84 = vector.extract_strided_slice %41 {offsets = [112, 0], sizes = [8, 72], strides = [1, 1]} : vector<192x72xf32> to vector<8x72xf32>
    %85 = vector.extract_strided_slice %41 {offsets = [120, 0], sizes = [8, 72], strides = [1, 1]} : vector<192x72xf32> to vector<8x72xf32>
    %86 = arith.maximumf %84, %85 : vector<8x72xf32>
    %c7 = arith.constant 7 : index
    %c0_51 = arith.constant 0 : index
    %c0_52 = arith.constant 0 : index
    %87 = vector.load %arg13[%c7, %c0_51, %c0_52] : memref<12x8x72xf32, #tpu.memory_space<vmem>>, vector<1x8x72xf32>
    %88 = vector.shape_cast %87 : vector<1x8x72xf32> to vector<8x72xf32>
    %89 = vector.shape_cast %86 : vector<8x72xf32> to vector<1x8x72xf32>
    tpu.vector_store %arg13[%c7, %c0_51, %c0_52], %89 {strides = array<i32>} : memref<12x8x72xf32, #tpu.memory_space<vmem>>, vector<1x8x72xf32>,
    %90 = vector.extract_strided_slice %41 {offsets = [128, 0], sizes = [8, 72], strides = [1, 1]} : vector<192x72xf32> to vector<8x72xf32>
    %91 = vector.extract_strided_slice %41 {offsets = [136, 0], sizes = [8, 72], strides = [1, 1]} : vector<192x72xf32> to vector<8x72xf32>
    %92 = arith.maximumf %90, %91 : vector<8x72xf32>
    %c8 = arith.constant 8 : index
    %c0_53 = arith.constant 0 : index
    %c0_54 = arith.constant 0 : index
    %93 = vector.load %arg13[%c8, %c0_53, %c0_54] : memref<12x8x72xf32, #tpu.memory_space<vmem>>, vector<1x8x72xf32>
    %94 = vector.shape_cast %93 : vector<1x8x72xf32> to vector<8x72xf32>
    %95 = vector.shape_cast %92 : vector<8x72xf32> to vector<1x8x72xf32>
    tpu.vector_store %arg13[%c8, %c0_53, %c0_54], %95 {strides = array<i32>} : memref<12x8x72xf32, #tpu.memory_space<vmem>>, vector<1x8x72xf32>,
    %96 = vector.extract_strided_slice %41 {offsets = [144, 0], sizes = [8, 72], strides = [1, 1]} : vector<192x72xf32> to vector<8x72xf32>
    %97 = vector.extract_strided_slice %41 {offsets = [152, 0], sizes = [8, 72], strides = [1, 1]} : vector<192x72xf32> to vector<8x72xf32>
    %98 = arith.maximumf %96, %97 : vector<8x72xf32>
    %c9 = arith.constant 9 : index
    %c0_55 = arith.constant 0 : index
    %c0_56 = arith.constant 0 : index
    %99 = vector.load %arg13[%c9, %c0_55, %c0_56] : memref<12x8x72xf32, #tpu.memory_space<vmem>>, vector<1x8x72xf32>
    %100 = vector.shape_cast %99 : vector<1x8x72xf32> to vector<8x72xf32>
    %101 = vector.shape_cast %98 : vector<8x72xf32> to vector<1x8x72xf32>
    tpu.vector_store %arg13[%c9, %c0_55, %c0_56], %101 {strides = array<i32>} : memref<12x8x72xf32, #tpu.memory_space<vmem>>, vector<1x8x72xf32>,
    %102 = vector.extract_strided_slice %41 {offsets = [160, 0], sizes = [8, 72], strides = [1, 1]} : vector<192x72xf32> to vector<8x72xf32>
    %103 = vector.extract_strided_slice %41 {offsets = [168, 0], sizes = [8, 72], strides = [1, 1]} : vector<192x72xf32> to vector<8x72xf32>
    %104 = arith.maximumf %102, %103 : vector<8x72xf32>
    %c10 = arith.constant 10 : index
    %c0_57 = arith.constant 0 : index
    %c0_58 = arith.constant 0 : index
    %105 = vector.load %arg13[%c10, %c0_57, %c0_58] : memref<12x8x72xf32, #tpu.memory_space<vmem>>, vector<1x8x72xf32>
    %106 = vector.shape_cast %105 : vector<1x8x72xf32> to vector<8x72xf32>
    %107 = vector.shape_cast %104 : vector<8x72xf32> to vector<1x8x72xf32>
    tpu.vector_store %arg13[%c10, %c0_57, %c0_58], %107 {strides = array<i32>} : memref<12x8x72xf32, #tpu.memory_space<vmem>>, vector<1x8x72xf32>,
    %108 = vector.extract_strided_slice %41 {offsets = [176, 0], sizes = [8, 72], strides = [1, 1]} : vector<192x72xf32> to vector<8x72xf32>
    %109 = vector.extract_strided_slice %41 {offsets = [184, 0], sizes = [8, 72], strides = [1, 1]} : vector<192x72xf32> to vector<8x72xf32>
    %110 = arith.maximumf %108, %109 : vector<8x72xf32>
    %c11 = arith.constant 11 : index
    %c0_59 = arith.constant 0 : index
    %c0_60 = arith.constant 0 : index
    %111 = vector.load %arg13[%c11, %c0_59, %c0_60] : memref<12x8x72xf32, #tpu.memory_space<vmem>>, vector<1x8x72xf32>
    %112 = vector.shape_cast %111 : vector<1x8x72xf32> to vector<8x72xf32>
    %113 = vector.shape_cast %110 : vector<8x72xf32> to vector<1x8x72xf32>
    tpu.vector_store %arg13[%c11, %c0_59, %c0_60], %113 {strides = array<i32>} : memref<12x8x72xf32, #tpu.memory_space<vmem>>, vector<1x8x72xf32>,
    %c0_61 = arith.constant 0 : index
    %c0_62 = arith.constant 0 : index
    %c0_63 = arith.constant 0 : index
    %114 = vector.load %arg13[%c0_61, %c0_62, %c0_63] : memref<12x8x72xf32, #tpu.memory_space<vmem>>, vector<8x8x72xf32>
    %115 = vector.shape_cast %114 : vector<8x8x72xf32> to vector<64x72xf32>
    %116 = arith.truncf %115 : vector<64x72xf32> to vector<64x72xbf16>
    %c0_64 = arith.constant 0 : index
    %c0_65 = arith.constant 0 : index
    %c0_66 = arith.constant 0 : index
    %117 = vector.load %arg4[%c0_64, %c0_65, %c0_66] : memref<5x72x176xbf16, #tpu.memory_space<vmem>>, vector<1x72x176xbf16>
    %118 = vector.shape_cast %117 : vector<1x72x176xbf16> to vector<72x176xbf16>
    %cst_67 = arith.constant dense<0.000000e+00> : vector<64x176xf32>
    %119 = tpu.matmul %116, %118, %cst_67 {dimension_numbers = #tpu.dot_dimension_numbers<[1], [0], [0], [1], [0, 0, 1, 1], [], []>} : vector<64x72xbf16>, vector<72x176xbf16>, vector<64x176xf32> -> vector<64x176xf32>
    %c1_68 = arith.constant 1 : index
    %c0_69 = arith.constant 0 : index
    %c0_70 = arith.constant 0 : index
    %120 = vector.load %arg13[%c1_68, %c0_69, %c0_70] : memref<12x8x72xf32, #tpu.memory_space<vmem>>, vector<8x8x72xf32>
    %121 = vector.shape_cast %120 : vector<8x8x72xf32> to vector<64x72xf32>
    %122 = arith.truncf %121 : vector<64x72xf32> to vector<64x72xbf16>
    %c1_71 = arith.constant 1 : index
    %c0_72 = arith.constant 0 : index
    %c0_73 = arith.constant 0 : index
    %123 = vector.load %arg4[%c1_71, %c0_72, %c0_73] : memref<5x72x176xbf16, #tpu.memory_space<vmem>>, vector<1x72x176xbf16>
    %124 = vector.shape_cast %123 : vector<1x72x176xbf16> to vector<72x176xbf16>
    %cst_74 = arith.constant dense<0.000000e+00> : vector<64x176xf32>
    %125 = tpu.matmul %122, %124, %cst_74 {dimension_numbers = #tpu.dot_dimension_numbers<[1], [0], [0], [1], [0, 0, 1, 1], [], []>} : vector<64x72xbf16>, vector<72x176xbf16>, vector<64x176xf32> -> vector<64x176xf32>
    %126 = arith.addf %119, %125 : vector<64x176xf32>
    %c2_75 = arith.constant 2 : index
    %c0_76 = arith.constant 0 : index
    %c0_77 = arith.constant 0 : index
    %127 = vector.load %arg13[%c2_75, %c0_76, %c0_77] : memref<12x8x72xf32, #tpu.memory_space<vmem>>, vector<8x8x72xf32>
    %128 = vector.shape_cast %127 : vector<8x8x72xf32> to vector<64x72xf32>
    %129 = arith.truncf %128 : vector<64x72xf32> to vector<64x72xbf16>
    %c2_78 = arith.constant 2 : index
    %c0_79 = arith.constant 0 : index
    %c0_80 = arith.constant 0 : index
    %130 = vector.load %arg4[%c2_78, %c0_79, %c0_80] : memref<5x72x176xbf16, #tpu.memory_space<vmem>>, vector<1x72x176xbf16>
    %131 = vector.shape_cast %130 : vector<1x72x176xbf16> to vector<72x176xbf16>
    %cst_81 = arith.constant dense<0.000000e+00> : vector<64x176xf32>
    %132 = tpu.matmul %129, %131, %cst_81 {dimension_numbers = #tpu.dot_dimension_numbers<[1], [0], [0], [1], [0, 0, 1, 1], [], []>} : vector<64x72xbf16>, vector<72x176xbf16>, vector<64x176xf32> -> vector<64x176xf32>
    %133 = arith.addf %126, %132 : vector<64x176xf32>
    %c3_82 = arith.constant 3 : index
    %c0_83 = arith.constant 0 : index
    %c0_84 = arith.constant 0 : index
    %134 = vector.load %arg13[%c3_82, %c0_83, %c0_84] : memref<12x8x72xf32, #tpu.memory_space<vmem>>, vector<8x8x72xf32>
    %135 = vector.shape_cast %134 : vector<8x8x72xf32> to vector<64x72xf32>
    %136 = arith.truncf %135 : vector<64x72xf32> to vector<64x72xbf16>
    %c3_85 = arith.constant 3 : index
    %c0_86 = arith.constant 0 : index
    %c0_87 = arith.constant 0 : index
    %137 = vector.load %arg4[%c3_85, %c0_86, %c0_87] : memref<5x72x176xbf16, #tpu.memory_space<vmem>>, vector<1x72x176xbf16>
    %138 = vector.shape_cast %137 : vector<1x72x176xbf16> to vector<72x176xbf16>
    %cst_88 = arith.constant dense<0.000000e+00> : vector<64x176xf32>
    %139 = tpu.matmul %136, %138, %cst_88 {dimension_numbers = #tpu.dot_dimension_numbers<[1], [0], [0], [1], [0, 0, 1, 1], [], []>} : vector<64x72xbf16>, vector<72x176xbf16>, vector<64x176xf32> -> vector<64x176xf32>
    %140 = arith.addf %133, %139 : vector<64x176xf32>
    %c4_89 = arith.constant 4 : index
    %c0_90 = arith.constant 0 : index
    %c0_91 = arith.constant 0 : index
    %141 = vector.load %arg13[%c4_89, %c0_90, %c0_91] : memref<12x8x72xf32, #tpu.memory_space<vmem>>, vector<8x8x72xf32>
    %142 = vector.shape_cast %141 : vector<8x8x72xf32> to vector<64x72xf32>
    %143 = arith.truncf %142 : vector<64x72xf32> to vector<64x72xbf16>
    %c4_92 = arith.constant 4 : index
    %c0_93 = arith.constant 0 : index
    %c0_94 = arith.constant 0 : index
    %144 = vector.load %arg4[%c4_92, %c0_93, %c0_94] : memref<5x72x176xbf16, #tpu.memory_space<vmem>>, vector<1x72x176xbf16>
    %145 = vector.shape_cast %144 : vector<1x72x176xbf16> to vector<72x176xbf16>
    %cst_95 = arith.constant dense<0.000000e+00> : vector<64x176xf32>
    %146 = tpu.matmul %143, %145, %cst_95 {dimension_numbers = #tpu.dot_dimension_numbers<[1], [0], [0], [1], [0, 0, 1, 1], [], []>} : vector<64x72xbf16>, vector<72x176xbf16>, vector<64x176xf32> -> vector<64x176xf32>
    %147 = arith.addf %140, %146 : vector<64x176xf32>
    %148 = vector.extract_strided_slice %147 {offsets = [0, 0], sizes = [64, 48], strides = [1, 1]} : vector<64x176xf32> to vector<64x48xf32>
    %149 = vector.extract_strided_slice %147 {offsets = [0, 128], sizes = [64, 48], strides = [1, 1]} : vector<64x176xf32> to vector<64x48xf32>
    %150 = arith.maximumf %148, %149 : vector<64x48xf32>
    %c0_96 = arith.constant 0 : index
    %c0_97 = arith.constant 0 : index
    %151 = vector.load %arg5[%c0_96, %c0_97] : memref<1x48xf32, #tpu.memory_space<vmem>>, vector<1x48xf32>
    %152 = vector.broadcast %151 : vector<1x48xf32> to vector<64x48xf32>
    %153 = arith.addf %150, %152 : vector<64x48xf32>
    %cst_98 = arith.constant 0.000000e+00 : f32
    %154 = vector.broadcast %cst_98 : f32 to vector<64x48xf32>
    %155 = arith.maximumf %153, %154 : vector<64x48xf32>
    %156 = vector.extract_strided_slice %155 {offsets = [0, 0], sizes = [8, 48], strides = [1, 1]} : vector<64x48xf32> to vector<8x48xf32>
    %157 = vector.extract_strided_slice %155 {offsets = [8, 0], sizes = [8, 48], strides = [1, 1]} : vector<64x48xf32> to vector<8x48xf32>
    %158 = arith.maximumf %156, %157 : vector<8x48xf32>
    %159 = arith.truncf %158 : vector<8x48xf32> to vector<8x48xbf16>
    %c0_99 = arith.constant 0 : index
    %c0_100 = arith.constant 0 : index
    %c0_101 = arith.constant 0 : index
    %160 = vector.load %arg6[%c0_99, %c0_100, %c0_101] : memref<4x48x128xbf16, #tpu.memory_space<vmem>>, vector<1x48x128xbf16>
    %161 = vector.shape_cast %160 : vector<1x48x128xbf16> to vector<48x128xbf16>
    %cst_102 = arith.constant dense<0.000000e+00> : vector<8x128xf32>
    %162 = tpu.matmul %159, %161, %cst_102 {dimension_numbers = #tpu.dot_dimension_numbers<[1], [0], [0], [1], [0, 0, 1, 1], [], []>} : vector<8x48xbf16>, vector<48x128xbf16>, vector<8x128xf32> -> vector<8x128xf32>
    %163 = vector.extract_strided_slice %155 {offsets = [16, 0], sizes = [8, 48], strides = [1, 1]} : vector<64x48xf32> to vector<8x48xf32>
    %164 = vector.extract_strided_slice %155 {offsets = [24, 0], sizes = [8, 48], strides = [1, 1]} : vector<64x48xf32> to vector<8x48xf32>
    %165 = arith.maximumf %163, %164 : vector<8x48xf32>
    %166 = arith.truncf %165 : vector<8x48xf32> to vector<8x48xbf16>
    %c1_103 = arith.constant 1 : index
    %c0_104 = arith.constant 0 : index
    %c0_105 = arith.constant 0 : index
    %167 = vector.load %arg6[%c1_103, %c0_104, %c0_105] : memref<4x48x128xbf16, #tpu.memory_space<vmem>>, vector<1x48x128xbf16>
    %168 = vector.shape_cast %167 : vector<1x48x128xbf16> to vector<48x128xbf16>
    %cst_106 = arith.constant dense<0.000000e+00> : vector<8x128xf32>
    %169 = tpu.matmul %166, %168, %cst_106 {dimension_numbers = #tpu.dot_dimension_numbers<[1], [0], [0], [1], [0, 0, 1, 1], [], []>} : vector<8x48xbf16>, vector<48x128xbf16>, vector<8x128xf32> -> vector<8x128xf32>
    %170 = arith.addf %162, %169 : vector<8x128xf32>
    %171 = vector.extract_strided_slice %155 {offsets = [32, 0], sizes = [8, 48], strides = [1, 1]} : vector<64x48xf32> to vector<8x48xf32>
    %172 = vector.extract_strided_slice %155 {offsets = [40, 0], sizes = [8, 48], strides = [1, 1]} : vector<64x48xf32> to vector<8x48xf32>
    %173 = arith.maximumf %171, %172 : vector<8x48xf32>
    %174 = arith.truncf %173 : vector<8x48xf32> to vector<8x48xbf16>
    %c2_107 = arith.constant 2 : index
    %c0_108 = arith.constant 0 : index
    %c0_109 = arith.constant 0 : index
    %175 = vector.load %arg6[%c2_107, %c0_108, %c0_109] : memref<4x48x128xbf16, #tpu.memory_space<vmem>>, vector<1x48x128xbf16>
    %176 = vector.shape_cast %175 : vector<1x48x128xbf16> to vector<48x128xbf16>
    %cst_110 = arith.constant dense<0.000000e+00> : vector<8x128xf32>
    %177 = tpu.matmul %174, %176, %cst_110 {dimension_numbers = #tpu.dot_dimension_numbers<[1], [0], [0], [1], [0, 0, 1, 1], [], []>} : vector<8x48xbf16>, vector<48x128xbf16>, vector<8x128xf32> -> vector<8x128xf32>
    %178 = arith.addf %170, %177 : vector<8x128xf32>
    %179 = vector.extract_strided_slice %155 {offsets = [48, 0], sizes = [8, 48], strides = [1, 1]} : vector<64x48xf32> to vector<8x48xf32>
    %180 = vector.extract_strided_slice %155 {offsets = [56, 0], sizes = [8, 48], strides = [1, 1]} : vector<64x48xf32> to vector<8x48xf32>
    %181 = arith.maximumf %179, %180 : vector<8x48xf32>
    %182 = arith.truncf %181 : vector<8x48xf32> to vector<8x48xbf16>
    %c3_111 = arith.constant 3 : index
    %c0_112 = arith.constant 0 : index
    %c0_113 = arith.constant 0 : index
    %183 = vector.load %arg6[%c3_111, %c0_112, %c0_113] : memref<4x48x128xbf16, #tpu.memory_space<vmem>>, vector<1x48x128xbf16>
    %184 = vector.shape_cast %183 : vector<1x48x128xbf16> to vector<48x128xbf16>
    %cst_114 = arith.constant dense<0.000000e+00> : vector<8x128xf32>
    %185 = tpu.matmul %182, %184, %cst_114 {dimension_numbers = #tpu.dot_dimension_numbers<[1], [0], [0], [1], [0, 0, 1, 1], [], []>} : vector<8x48xbf16>, vector<48x128xbf16>, vector<8x128xf32> -> vector<8x128xf32>
    %186 = arith.addf %178, %185 : vector<8x128xf32>
    %c0_115 = arith.constant 0 : index
    %c0_116 = arith.constant 0 : index
    %187 = vector.load %arg7[%c0_115, %c0_116] : memref<1x128xf32, #tpu.memory_space<vmem>>, vector<1x128xf32>
    %188 = vector.broadcast %187 : vector<1x128xf32> to vector<8x128xf32>
    %189 = arith.addf %186, %188 : vector<8x128xf32>
    %cst_117 = arith.constant 0.000000e+00 : f32
    %190 = vector.broadcast %cst_117 : f32 to vector<8x128xf32>
    %191 = arith.maximumf %189, %190 : vector<8x128xf32>
    %192 = arith.truncf %191 : vector<8x128xf32> to vector<8x128xbf16>
    %c0_118 = arith.constant 0 : index
    %c0_119 = arith.constant 0 : index
    %193 = vector.load %arg8[%c0_118, %c0_119] : memref<128x128xbf16, #tpu.memory_space<vmem>>, vector<128x128xbf16>
    %cst_120 = arith.constant dense<0.000000e+00> : vector<8x128xf32>
    %194 = tpu.matmul %192, %193, %cst_120 {dimension_numbers = #tpu.dot_dimension_numbers<[1], [0], [0], [1], [0, 0, 1, 1], [], []>} : vector<8x128xbf16>, vector<128x128xbf16>, vector<8x128xf32> -> vector<8x128xf32>
    %c0_121 = arith.constant 0 : index
    %c0_122 = arith.constant 0 : index
    %195 = vector.load %arg9[%c0_121, %c0_122] : memref<1x128xf32, #tpu.memory_space<vmem>>, vector<1x128xf32>
    %196 = vector.broadcast %195 : vector<1x128xf32> to vector<8x128xf32>
    %197 = arith.addf %194, %196 : vector<8x128xf32>
    %cst_123 = arith.constant 0.000000e+00 : f32
    %198 = vector.broadcast %cst_123 : f32 to vector<8x128xf32>
    %199 = arith.maximumf %197, %198 : vector<8x128xf32>
    %200 = arith.truncf %199 : vector<8x128xf32> to vector<8x128xbf16>
    %c0_124 = arith.constant 0 : index
    %c0_125 = arith.constant 0 : index
    %201 = vector.load %arg10[%c0_124, %c0_125] : memref<128x128xbf16, #tpu.memory_space<vmem>>, vector<128x128xbf16>
    %cst_126 = arith.constant dense<0.000000e+00> : vector<8x128xf32>
    %202 = tpu.matmul %200, %201, %cst_126 {dimension_numbers = #tpu.dot_dimension_numbers<[1], [0], [0], [1], [0, 0, 1, 1], [], []>} : vector<8x128xbf16>, vector<128x128xbf16>, vector<8x128xf32> -> vector<8x128xf32>
    %c0_127 = arith.constant 0 : index
    %c0_128 = arith.constant 0 : index
    %203 = vector.load %arg11[%c0_127, %c0_128] : memref<1x128xf32, #tpu.memory_space<vmem>>, vector<1x128xf32>
    %204 = vector.broadcast %203 : vector<1x128xf32> to vector<8x128xf32>
    %205 = arith.addf %202, %204 : vector<8x128xf32>
    %c0_129 = arith.constant 0 : index
    %c0_130 = arith.constant 0 : index
    %206 = vector.load %arg12[%c0_129, %c0_130] : memref<8x128xf32, #tpu.memory_space<vmem>>, vector<8x128xf32>
    tpu.vector_store %arg12[%c0_129, %c0_130], %205 {strides = array<i32>} : memref<8x128xf32, #tpu.memory_space<vmem>>, vector<8x128xf32>,
    return
  }
  func.func @transform_0(%arg0: i32) -> (i32, i32, i32) {
    %c0_i32 = arith.constant 0 : i32
    %c0_i32_0 = arith.constant 0 : i32
    %c0_i32_1 = arith.constant 0 : i32
    return %c0_i32, %arg0, %c0_i32_0 : i32, i32, i32
  }
  func.func @transform_1(%arg0: i32) -> (i32, i32, i32) {
    %c0_i32 = arith.constant 0 : i32
    %c0_i32_0 = arith.constant 0 : i32
    %c0_i32_1 = arith.constant 0 : i32
    %c0_i32_2 = arith.constant 0 : i32
    return %c0_i32, %c0_i32_0, %c0_i32_1 : i32, i32, i32
  }
  func.func @transform_2(%arg0: i32) -> (i32, i32) {
    %c0_i32 = arith.constant 0 : i32
    %c0_i32_0 = arith.constant 0 : i32
    %c0_i32_1 = arith.constant 0 : i32
    return %c0_i32, %c0_i32_0 : i32, i32
  }
  func.func @transform_3(%arg0: i32) -> (i32, i32, i32) {
    %c0_i32 = arith.constant 0 : i32
    %c0_i32_0 = arith.constant 0 : i32
    %c0_i32_1 = arith.constant 0 : i32
    %c0_i32_2 = arith.constant 0 : i32
    return %c0_i32, %c0_i32_0, %c0_i32_1 : i32, i32, i32
  }
  func.func @transform_4(%arg0: i32) -> (i32, i32) {
    %c0_i32 = arith.constant 0 : i32
    %c0_i32_0 = arith.constant 0 : i32
    %c0_i32_1 = arith.constant 0 : i32
    return %c0_i32, %c0_i32_0 : i32, i32
  }
  func.func @transform_5(%arg0: i32) -> (i32, i32, i32) {
    %c0_i32 = arith.constant 0 : i32
    %c0_i32_0 = arith.constant 0 : i32
    %c0_i32_1 = arith.constant 0 : i32
    %c0_i32_2 = arith.constant 0 : i32
    return %c0_i32, %c0_i32_0, %c0_i32_1 : i32, i32, i32
  }
  func.func @transform_6(%arg0: i32) -> (i32, i32) {
    %c0_i32 = arith.constant 0 : i32
    %c0_i32_0 = arith.constant 0 : i32
    %c0_i32_1 = arith.constant 0 : i32
    return %c0_i32, %c0_i32_0 : i32, i32
  }
  func.func @transform_7(%arg0: i32) -> (i32, i32) {
    %c0_i32 = arith.constant 0 : i32
    %c0_i32_0 = arith.constant 0 : i32
    %c0_i32_1 = arith.constant 0 : i32
    return %c0_i32, %c0_i32_0 : i32, i32
  }
  func.func @transform_8(%arg0: i32) -> (i32, i32) {
    %c0_i32 = arith.constant 0 : i32
    %c0_i32_0 = arith.constant 0 : i32
    %c0_i32_1 = arith.constant 0 : i32
    return %c0_i32, %c0_i32_0 : i32, i32
  }
  func.func @transform_9(%arg0: i32) -> (i32, i32) {
    %c0_i32 = arith.constant 0 : i32
    %c0_i32_0 = arith.constant 0 : i32
    %c0_i32_1 = arith.constant 0 : i32
    return %c0_i32, %c0_i32_0 : i32, i32
  }
  func.func @transform_10(%arg0: i32) -> (i32, i32) {
    %c0_i32 = arith.constant 0 : i32
    %c0_i32_0 = arith.constant 0 : i32
    %c0_i32_1 = arith.constant 0 : i32
    return %c0_i32, %c0_i32_0 : i32, i32
  }
  func.func @transform_11(%arg0: i32) -> (i32, i32) {
    %c0_i32 = arith.constant 0 : i32
    %c0_i32_0 = arith.constant 0 : i32
    return %arg0, %c0_i32 : i32, i32
  }
}

</mosaic_0001>

<bundles_post_ra>
// kernel: tile.13
= control target key start
LH: loop header
LB: loop body
LE: loop exit
PB: predicated region body
PF: predicated region fallthrough
CT: control target
= control target key end

     0   :  { %s28_s0 = inlined_call_operand.vmem [shape: f32[6], index: 0, kind: input, shape index: {}]   ;;  %s29_s1 = inlined_call_operand.vmem [shape: f32[12,6], index: 1, kind: output, shape index: {}]  }
   0x1   :  { %v4_v0 = vld [vmem:[%s28_s0] ss:$0 sm:$0xff] }
   0x2   :  { %5 = vst [vmem:[%s29_s1] sm:$0xff] %v4_v0  ;;  %8 = vst [vmem:[%s29_s1 + $0x8] sm:$0xff] %v4_v0 }

// kernel: tile.14
= control target key start
LH: loop header
LB: loop body
LE: loop exit
PB: predicated region body
PF: predicated region fallthrough
CT: control target
= control target key end

     0   :  { %s99_s10 = smov 66   ;;  %s100_s11 = smov 54   ;;  %vm3_vm0 = vcmask 48128   ;;  %vm9_vm1 = vcmask 589328   ;;  %vm15_vm2 = vcmask 540128   ;;  %vm21_vm3 = vcmask 490928   ;;  %s159_s0 = inlined_call_operand.vmem [shape: f32[12,6], index: 0, kind: input, shape index: {}]   ;;  %s160_s1 = inlined_call_operand.vmem [shape: f32[1,72], index: 1, kind: output, shape index: {}]  }
   0x1   :  { %v77_v0 = vld [vmem:[%s159_s0 + $0xb] sm:$0x1]   ;;  %v79_v1 = vld [vmem:[%s159_s0 + $0x9] sm:$0x1]   ;;  %v78_v2 = vld [vmem:[%s159_s0 + $0xa] sm:$0x1]  }
   0x2   :  { %7 = vrot.lane.b32.xlu0 %v77_v0, %s99_s10  ;;  %19 = vrot.lane.b32.xlu1 %v79_v1, %s100_s11  ;;  %v80_v3 = vld [vmem:[%s159_s0 + $0x8] sm:$0x1]   ;;  %s101_s16 = smov 60   ;;  %s102_s17 = smov 48   ;;  %v81_v4 = vld [vmem:[%s159_s0 + $0x7] sm:$0x1]  }
   0x3   :  { %v2_v5 = vld [vmem:[%s159_s0] sm:$0x1]   ;;  %v82_v6 = vld [vmem:[%s159_s0 + $0x6] sm:$0x1]   ;;  %s103_s24 = smov 42   ;;  %s104_s25 = smov 36  }
   0x4   :  { %4 = vst.msk [vmem:[#allocation0] sm:$0x1] %vm3_vm0, %v2_v5   ;;  %v83_v7 = vld [vmem:[%s159_s0 + $0x5] sm:$0x1]   ;;  %v84_v8 = vld [vmem:[%s159_s0 + $0x4] sm:$0x1]  }
   0x5   :  { %s105_s30 = smov 30   ;;  %s106_s2 = smov 24   ;;  %v85_v9 = vld [vmem:[%s159_s0 + $0x3] sm:$0x1]   ;;  %v86_v10 = vld [vmem:[%s159_s0 + $0x2] sm:$0x1]  }
   0x6   :  { %13 = vrot.lane.b32.xlu0 %v78_v2, %s101_s16  ;;  %25 = vrot.lane.b32.xlu1 %v80_v3, %s102_s17  ;;  %s107_s7 = smov 18   ;;  %s108_s8 = smov 12   ;;  %v87_v11 = vld [vmem:[%s159_s0 + $0x1] sm:$0x1]   ;;  %vm27_vm4 = vcmask 441728   ;;  %vm33_vm5 = vcmask 392528  }
   0x7   :  { %s109_s0 = smov 6   ;;  %vm39_vm6 = vcmask 343328   ;;  %vm45_vm7 = vcmask 294128   ;;  %vm51_vm8 = vcmask 244928   ;;  %vm57_vm9 = vcmask 195728  }
   0x8   :  { %vm63_vm10 = vcmask 146528   ;;  %vm69_vm11 = vcmask 97328  }
   0xa   :  { %31 = vrot.lane.b32.xlu0 %v81_v4, %s103_s24  ;;  %37 = vrot.lane.b32.xlu1 %v82_v6, %s104_s25 }
   0xe   :  { %43 = vrot.lane.b32.xlu0 %v83_v7, %s105_s30  ;;  %49 = vrot.lane.b32.xlu1 %v84_v8, %s106_s2 }
  0x12   :  { %55 = vrot.lane.b32.xlu0 %v85_v9, %s107_s7  ;;  %61 = vrot.lane.b32.xlu1 %v86_v10, %s108_s8 }
  0x16   :  { %67 = vrot.lane.b32.xlu0 %v87_v11, %s109_s0 }
  0x74   :  { %v8_v12 = vpop.permute.xlu0 %7   ;;  %v20_v13 = vpop.permute.xlu1 %19  }
  0x75   :  { %10 = vst.msk [vmem:[#allocation0] sm:$0x1] %vm9_vm1, %v8_v12  }
  0x78   :  { %v14_v14 = vpop.permute.xlu0 %13   ;;  %v26_v15 = vpop.permute.xlu1 %25  }
  0x79   :  { %16 = vst.msk [vmem:[#allocation0] sm:$0x1] %vm15_vm2, %v14_v14  }
  0x7a   :  { %22 = vst.msk [vmem:[#allocation0] sm:$0x1] %vm21_vm3, %v20_v13  }
  0x7b   :  { %28 = vst.msk [vmem:[#allocation0] sm:$0x1] %vm27_vm4, %v26_v15  }
  0x7c   :  { %v32_v16 = vpop.permute.xlu0 %31   ;;  %v38_v17 = vpop.permute.xlu1 %37  }
  0x7d   :  { %34 = vst.msk [vmem:[#allocation0] sm:$0x1] %vm33_vm5, %v32_v16  }
  0x7e   :  { %40 = vst.msk [vmem:[#allocation0] sm:$0x1] %vm39_vm6, %v38_v17  }
  0x80   :  { %v44_v18 = vpop.permute.xlu0 %43   ;;  %v50_v19 = vpop.permute.xlu1 %49  }
  0x81   :  { %46 = vst.msk [vmem:[#allocation0] sm:$0x1] %vm45_vm7, %v44_v18  }
  0x82   :  { %52 = vst.msk [vmem:[#allocation0] sm:$0x1] %vm51_vm8, %v50_v19  }
  0x84   :  { %v56_v20 = vpop.permute.xlu0 %55   ;;  %v62_v21 = vpop.permute.xlu1 %61  }
  0x85   :  { %58 = vst.msk [vmem:[#allocation0] sm:$0x1] %vm57_vm9, %v56_v20  }
  0x86   :  { %64 = vst.msk [vmem:[#allocation0] sm:$0x1] %vm63_vm10, %v62_v21  }
  0x88   :  { %v68_v22 = vpop.permute.xlu0 %67  }
  0x89   :  { %70 = vst.msk [vmem:[#allocation0] sm:$0x1] %vm69_vm11, %v68_v22  }
  0x90   :  { %v74_v23 = vld [vmem:[#allocation0] sm:$0x1] }
  0x91   :  { %76 = vst [vmem:[%s160_s1] sm:$0x1] %v74_v23 }

// kernel: tile.18
= control target key start
LH: loop header
LB: loop body
LE: loop exit
PB: predicated region body
PF: predicated region fallthrough
CT: control target
= control target key end

     0   :  { %s22_s0 = inlined_call_operand.vmem [shape: f32[12], index: 0, kind: input, shape index: {}]   ;;  %s23_s1 = inlined_call_operand.vmem [shape: f32[4,12], index: 1, kind: output, shape index: {}]  }
   0x1   :  { %v4_v0 = vld [vmem:[%s22_s0] ss:$0 sm:$0xff] }
   0x2   :  { %5 = vst [vmem:[%s23_s1] sm:$0xf] %v4_v0 }

// kernel: tile.19
= control target key start
LH: loop header
LB: loop body
LE: loop exit
PB: predicated region body
PF: predicated region fallthrough
CT: control target
= control target key end

     0   :  { %vm7_vm0 = vcmask 97280   ;;  %s37_s8 = smov 12   ;;  %s38_s9 = smov 24   ;;  %vm13_vm1 = vcmask 392480   ;;  %vm19_vm2 = vcmask 294080   ;;  %vm25_vm3 = vcmask 195680   ;;  %s55_s0 = inlined_call_operand.vmem [shape: f32[4,12], index: 0, kind: input, shape index: {}]   ;;  %s56_s1 = inlined_call_operand.vmem [shape: f32[1,48], index: 1, kind: output, shape index: {}]  }
   0x1   :  { %v4_v0 = vld [vmem:[%s55_s0] sm:$0xf]  ;;  %s36_s0 = smov 36  }
   0x2   :  { %5 = vst [vmem:[#allocation1] sm:$0xf] %v4_v0 }
   0x9   :  { %v10_v1 = vld [vmem:[#allocation1 + $0x3] sm:$0x1]   ;;  %v22_v2 = vld [vmem:[#allocation1 + $0x1] sm:$0x1]   ;;  %v6_v3 = vld [vmem:[#allocation1] sm:$0x1]  }
   0xa   :  { %11 = vrot.lane.b32.xlu0 %v10_v1, %s36_s0  ;;  %23 = vrot.lane.b32.xlu1 %v22_v2, %s37_s8  ;;  %v16_v4 = vld [vmem:[#allocation1 + $0x2] sm:$0x1]   ;;  %8 = vst.msk [vmem:[#allocation0] sm:$0x1] %vm7_vm0, %v6_v3  }
   0xe   :  { %17 = vrot.lane.b32.xlu0 %v16_v4, %s38_s9 }
  0x7c   :  { %v12_v5 = vpop.permute.xlu0 %11   ;;  %v24_v6 = vpop.permute.xlu1 %23  }
  0x7d   :  { %14 = vst.msk [vmem:[#allocation0] sm:$0x1] %vm13_vm1, %v12_v5  }
  0x80   :  { %v18_v7 = vpop.permute.xlu0 %17  }
  0x81   :  { %20 = vst.msk [vmem:[#allocation0] sm:$0x1] %vm19_vm2, %v18_v7  }
  0x82   :  { %26 = vst.msk [vmem:[#allocation0] sm:$0x1] %vm25_vm3, %v24_v6  }
  0x89   :  { %v30_v8 = vld [vmem:[#allocation0] sm:$0x1] }
  0x8a   :  { %32 = vst [vmem:[%s56_s1] sm:$0x1] %v30_v8 }

// kernel: network_forward.1
= control target key start
LH: loop header
LB: loop body
LE: loop exit
PB: predicated region body
PF: predicated region fallthrough
CT: control target
= control target key end

     0   :  { %v4884_v1 = vmov 0   ;;  %vm176_vm0 = vcmask 1045504   ;;  %vm139_vm1 = vcmask 228352   ;;  %vm1673_vm2 = vcmask 1043456   ;;  %s4872_s1 = inlined_call_operand.vmem [shape: bf16[5,28,200], index: 1, kind: input, shape index: {}]   ;;  %s4873_s0 = inlined_call_operand.vmem [shape: f32[28,8,28], index: 0, kind: input, shape index: {}]   ;;  %s4874_s3 = inlined_call_operand.vmem [shape: bf16[5,72,176], index: 3, kind: input, shape index: {}]   ;;  %s4875_s2 = inlined_call_operand.vmem [shape: f32[1,72], index: 2, kind: input, shape index: {}]   ;;  %s4876_s5 = inlined_call_operand.vmem [shape: bf16[4,48,128], index: 5, kind: input, shape index: {}]   ;;  %s4877_s4 = inlined_call_operand.vmem [shape: f32[1,48], index: 4, kind: input, shape index: {}]   ;;  %s4878_s7 = inlined_call_operand.vmem [shape: bf16[128,128], index: 7, kind: input, shape index: {}]   ;;  %s4879_s9 = inlined_call_operand.vmem [shape: bf16[128,128], index: 9, kind: input, shape index: {}]   ;;  %s4880_s6 = inlined_call_operand.vmem [shape: f32[1,128], index: 6, kind: input, shape index: {}]   ;;  %s4881_s8 = inlined_call_operand.vmem [shape: f32[1,128], index: 8, kind: input, shape index: {}]   ;;  %s4882_s10 = inlined_call_operand.vmem [shape: f32[1,128], index: 10, kind: input, shape index: {}]   ;;  %s4883_s11 = inlined_call_operand.vmem [shape: f32[8,128], index: 11, kind: output, shape index: {}]  }
   0x1   :  { %v3699_v0 = vld [vmem:[%s4872_s1 + $0x4] ss:$8 sps:$4 sm:$0xff]   ;;  %428 = vmatprep.mubr.bf16.mxu0 %v4884_v1  ;;  %215 = vmatprep.mubr.bf16.mxu1 %v4884_v1  ;;  %v3701_v2 = vld [vmem:[%s4872_s1] ss:$8 sps:$4 sm:$0xff]   ;;  %v3931_v13 = vld [vmem:[%s4873_s0 + $0x10] sm:$0xff]  ;;  %vm1538_vm3 = vcmask 588800  }
   0x2   :  { %396 = vmatprep.subr.bf16.mxu0 %v3699_v0  ;;  %v3702_v3 = vld [vmem:[%s4872_s1 + $0x14] ss:$8 sps:$4 sm:$0x3f]   ;;  %v3704_v4 = vld [vmem:[%s4872_s1 + $0x10] ss:$8 sps:$4 sm:$0x3f]  }
   0x3   :  { %397 = vmatpush1.bf16.msra.mxu0 %v3701_v2  ;;  %v39_v5 = vld [vmem:[%s4873_s0] sm:$0xff]  ;;  %v3909_v6 = vld [vmem:[%s4873_s0 + $0x8] sm:$0xff]  ;;  %v391_v7 = vsel %vm176_vm0, %v3704_v4, 0  ;;  %v3708_v11 = vld [vmem:[%s4872_s1 + $0x54] ss:$8 sps:$4 sm:$0x3f]  }
   0x4   :  { %3012 = vmatprep.subr.msk.bf16.mxu0 %vm176_vm0, %v3702_v3  ;;  %v3707_v8 = vld [vmem:[%s4872_s1 + $0x44] ss:$8 sps:$4 sm:$0xff]   ;;  %v63_v9 = vpack.c.bf16 %v3909_v6, %v39_v5  ;;  %v3705_v10 = vld [vmem:[%s4872_s1 + $0x40] ss:$8 sps:$4 sm:$0xff]   ;;  %v42_v14 = vld [vmem:[%s4873_s0 + $0x18] sm:$0xff]  ;;  %v104_v59 = vpack.c.bf16 %v3931_v13, %v3909_v6  ;;  %vm3828_vm4 = vmmov 0  }
   0x5   :  { %v3710_v12 = vld [vmem:[%s4872_s1 + $0x50] ss:$8 sps:$4 sm:$0x3f]   ;;  %v64_v16 = vpack.c.bf16 %v42_v14, %v3931_v13  ;;  %v3713_v17 = vld [vmem:[%s4872_s1 + $0x64] ss:$8 sps:$4 sm:$0xff]   ;;  %vm2477_vm5 = vcmask 392192  }
   0x6   :  { %v646_v15 = vsel %vm176_vm0, %v3710_v12, 0  ;;  %v43_v18 = vld [vmem:[%s4873_s0 + $0x20] sm:$0xff]  ;;  %v3950_v19 = vld [vmem:[%s4873_s0 + $0x28] sm:$0xff]  ;;  %v3961_v21 = vld [vmem:[%s4873_s0 + $0x30] sm:$0xff] }
   0x7   :  { %399 = vmatpush1.bf16.msra.mxu0 %v391_v7  ;;  %v3953_v20 = vpack.c.bf16 %v3950_v19, %v43_v18  ;;  %v3966_v22 = vld [vmem:[%s4873_s0 + $0x38] sm:$0xff]  ;;  %v3978_v24 = vld [vmem:[%s4873_s0 + $0x40] sm:$0xff]  ;;  %v3983_v25 = vld [vmem:[%s4873_s0 + $0x48] sm:$0xff]  ;;  %v4053_v38 = vpack.c.bf16 %v43_v18, %v42_v14  ;;  %v878_v60 = vpack.c.bf16 %v3961_v21, %v3950_v19 }
   0x8   :  { %651 = vmatprep.subr.bf16.mxu0 %v3707_v8  ;;  %v3970_v23 = vpack.c.bf16 %v3966_v22, %v3961_v21  ;;  %v3987_v26 = vpack.c.bf16 %v3983_v25, %v3978_v24  ;;  %v3995_v27 = vld [vmem:[%s4873_s0 + $0x50] sm:$0xff]  ;;  %v4000_v28 = vld [vmem:[%s4873_s0 + $0x58] sm:$0xff]  ;;  %v4012_v30 = vld [vmem:[%s4873_s0 + $0x60] sm:$0xff]  ;;  %v879_v63 = vpack.c.bf16 %v3978_v24, %v3966_v22 }
   0x9   :  { %v4004_v29 = vpack.c.bf16 %v4000_v28, %v3995_v27  ;;  %v4017_v31 = vld [vmem:[%s4873_s0 + $0x68] sm:$0xff]  ;;  %v4029_v33 = vld [vmem:[%s4873_s0 + $0x70] sm:$0xff]  ;;  %v4034_v34 = vld [vmem:[%s4873_s0 + $0x78] sm:$0xff]  ;;  %v880_v2 = vpack.c.bf16 %v3995_v27, %v3983_v25  ;;  %v881_v7 = vpack.c.bf16 %v4012_v30, %v4000_v28 }
   0xa   :  { %3013 = vmatmul.mubr.msk.bf16.vlgmr.msra.gmra.mrb[0].mxu0 %vm139_vm1, %v63_v9  ;;  %v4021_v32 = vpack.c.bf16 %v4017_v31, %v4012_v30  ;;  %v4038_v35 = vpack.c.bf16 %v4034_v34, %v4029_v33  ;;  %v4046_v36 = vld [vmem:[%s4873_s0 + $0x80] sm:$0xff]  ;;  %v4051_v37 = vld [vmem:[%s4873_s0 + $0x88] sm:$0xff]  ;;  %v4065_v40 = vld [vmem:[%s4873_s0 + $0x90] sm:$0xff]  ;;  %v882_v8 = vpack.c.bf16 %v4029_v33, %v4017_v31 }
   0xb   :  { %652 = vmatpush1.bf16.msra.mxu0 %v3705_v10  ;;  %438 = vmatprep.mubr.bf16.mxu0 %v4884_v1  ;;  %v4057_v39 = vpack.c.bf16 %v4051_v37, %v4046_v36  ;;  %v4070_v41 = vld [vmem:[%s4873_s0 + $0x98] sm:$0xff]  ;;  %v4082_v43 = vld [vmem:[%s4873_s0 + $0xa0] sm:$0xff]  ;;  %v4087_v44 = vld [vmem:[%s4873_s0 + $0xa8] sm:$0xff]  ;;  %v883_v9 = vpack.c.bf16 %v4046_v36, %v4034_v34  ;;  %v884_v10 = vpack.c.bf16 %v4065_v40, %v4051_v37 }
   0xc   :  { %3057 = vmatprep.subr.msk.bf16.mxu0 %vm176_vm0, %v3708_v11  ;;  %v4074_v42 = vpack.c.bf16 %v4070_v41, %v4065_v40  ;;  %v4091_v45 = vpack.c.bf16 %v4087_v44, %v4082_v43  ;;  %v4099_v46 = vld [vmem:[%s4873_s0 + $0xb0] sm:$0xff]  ;;  %v4104_v47 = vld [vmem:[%s4873_s0 + $0xb8] sm:$0xff]  ;;  %v3711_v49 = vld [vmem:[%s4872_s1 + $0x60] ss:$8 sps:$4 sm:$0xff]   ;;  %v885_v11 = vpack.c.bf16 %v4082_v43, %v4070_v41 }
   0xd   :  { %v4108_v48 = vpack.c.bf16 %v4104_v47, %v4099_v46  ;;  %v3714_v50 = vld [vmem:[%s4872_s1 + $0x74] ss:$8 sps:$4 sm:$0x3f]   ;;  %v3716_v51 = vld [vmem:[%s4872_s1 + $0x70] ss:$8 sps:$4 sm:$0x3f]   ;;  %v886_v12 = vpack.c.bf16 %v4099_v46, %v4087_v44 }
   0xe   :  { %v949_v52 = vsel %vm176_vm0, %v3716_v51, 0  ;;  %v3719_v53 = vld [vmem:[%s4872_s1 + $0x84] ss:$8 sps:$4 sm:$0xff]   ;;  %v3725_v55 = vld [vmem:[%s4872_s1 + $0x20] ss:$8 sps:$4 sm:$0xff]   ;;  %v3093_v18 = vld [vmem:[%s4873_s0 + $0xd0] sm:$0xff] }
   0xf   :  { %654 = vmatpush1.bf16.msra.mxu0 %v646_v15  ;;  %v3723_v54 = vld [vmem:[%s4872_s1 + $0x24] ss:$8 sps:$4 sm:$0xff]   ;;  %v3726_v56 = vld [vmem:[%s4872_s1 + $0x34] ss:$8 sps:$4 sm:$0x3f]  }
  0x10   :  { %954 = vmatprep.subr.bf16.mxu0 %v3713_v17  ;;  %183 = vmatprep.subr.bf16.mxu1 %v3723_v54  ;;  %v3728_v57 = vld [vmem:[%s4872_s1 + $0x30] ss:$8 sps:$4 sm:$0x3f]   ;;  %v3047_v61 = vld [vmem:[%s4873_s0 + $0xc0] sm:$0xff]  ;;  %v4190_v62 = vld [vmem:[%s4873_s0 + $0xc8] sm:$0xff] }
  0x11   :  { %184 = vmatpush1.bf16.msra.mxu1 %v3725_v55  ;;  %v178_v58 = vsel %vm176_vm0, %v3728_v57, 0  ;;  %v4195_v0 = vpack.c.bf16 %v4190_v62, %v3047_v61  ;;  %v3717_v3 = vld [vmem:[%s4872_s1 + $0x80] ss:$8 sps:$4 sm:$0xff]   ;;  %v3720_v4 = vld [vmem:[%s4872_s1 + $0x94] ss:$8 sps:$4 sm:$0x3f]   ;;  %v887_v13 = vpack.c.bf16 %v3047_v61, %v4104_v47  ;;  %v888_v19 = vpack.c.bf16 %v3093_v18, %v4190_v62 }
  0x12   :  { %3014 = vmatmul.mubr.msk.bf16.gmra.mrb[4].mxu0 %vm139_vm1, %v64_v16  ;;  %2995 = vmatprep.subr.msk.bf16.mxu1 %vm176_vm0, %v3726_v56  ;;  %v3722_v5 = vld [vmem:[%s4872_s1 + $0x90] ss:$8 sps:$4 sm:$0x3f]   ;;  %v3731_v15 = vld [vmem:[%s4874_s3 + $0x4c] ss:$8 sps:$4 sm:$0xff]  }
  0x13   :  { %448 = vmatprep.mubr.bf16.mxu0 %v4884_v1  ;;  %v1252_v6 = vsel %vm176_vm0, %v3722_v5, 0  ;;  %v3729_v14 = vld [vmem:[%s4874_s3 + $0x48] ss:$8 sps:$4 sm:$0xff]   ;;  %v3734_v17 = vld [vmem:[%s4874_s3 + $0x5c] ss:$8 sps:$4 sm:$0xff]  }
  0x14   :  { %v3138_v21 = vld [vmem:[%s4873_s0 + $0xd8] sm:$0xff]  ;;  %v3735_v31 = vld [vmem:[%s4874_s3 + $0x68] ss:$8 sps:$4 sm:$0xff]  }
  0x15   :  { %186 = vmatpush1.bf16.msra.mxu1 %v178_v58  ;;  %v1191_v25 = vpack.c.bf16 %v3138_v21, %v3093_v18  ;;  %v3740_v41 = vld [vmem:[%s4874_s3 + $0x7c] ss:$8 sps:$4 sm:$0xff]   ;;  %v3738_v43 = vld [vmem:[%s4874_s3 + $0x78] ss:$8 sps:$4 sm:$0xff]   ;;  %v3169_v46 = vld [vmem:[%s4874_s3 + $0x88] sm:$0xff] }
  0x16   :  { %1680 = vmatprep.subr.bf16.mxu1 %v3731_v15  ;;  %v3179_v47 = vcombine.high %v3169_v46, %v3169_v46 }
  0x18   :  { %2996 = vmatmul.mubr.msk.bf16.vlgmr.msra.gmra.mrb[0].mxu1 %vm139_vm1, %v104_v59 }
  0x19   :  { %225 = vmatprep.mubr.bf16.mxu1 %v4884_v1  ;;  %1681 = vmatpush1.bf16.msra.mxu1 %v3729_v14 }
  0x1a   :  { %3015 = vmatmul.mubr.msk.bf16.gmra.mrb[8].mxu0 %vm139_vm1, %v3953_v20  ;;  %1682 = vmatprep.subr.bf16.mxu1 %v3734_v17 }
  0x1b   :  { %458 = vmatprep.mubr.bf16.mxu0 %v4884_v1 }
  0x20   :  { %2997 = vmatmul.mubr.msk.bf16.gmra.mrb[4].mxu1 %vm139_vm1, %v4053_v38 }
  0x21   :  { %235 = vmatprep.mubr.bf16.mxu1 %v4884_v1 }
  0x22   :  { %3016 = vmatmul.mubr.msk.bf16.gmra.mrb[12].mxu0 %vm139_vm1, %v3970_v23 }
  0x23   :  { %468 = vmatprep.mubr.bf16.mxu0 %v4884_v1 }
  0x28   :  { %2998 = vmatmul.mubr.msk.bf16.gmra.mrb[8].mxu1 %vm139_vm1, %v878_v60 }
  0x29   :  { %245 = vmatprep.mubr.bf16.mxu1 %v4884_v1 }
  0x2a   :  { %3017 = vmatmul.mubr.msk.bf16.gmra.mrb[16].mxu0 %vm139_vm1, %v3987_v26 }
  0x2b   :  { %478 = vmatprep.mubr.bf16.mxu0 %v4884_v1 }
  0x30   :  { %2999 = vmatmul.mubr.msk.bf16.gmra.mrb[12].mxu1 %vm139_vm1, %v879_v63 }
  0x31   :  { %255 = vmatprep.mubr.bf16.mxu1 %v4884_v1 }
  0x32   :  { %3018 = vmatmul.mubr.msk.bf16.gmra.mrb[20].mxu0 %vm139_vm1, %v4004_v29 }
  0x33   :  { %488 = vmatprep.mubr.bf16.mxu0 %v4884_v1 }
  0x38   :  { %3000 = vmatmul.mubr.msk.bf16.gmra.mrb[16].mxu1 %vm139_vm1, %v880_v2 }
  0x39   :  { %265 = vmatprep.mubr.bf16.mxu1 %v4884_v1 }
  0x3a   :  { %3019 = vmatmul.mubr.msk.bf16.gmra.mrb[24].mxu0 %vm139_vm1, %v4021_v32 }
  0x3b   :  { %498 = vmatprep.mubr.bf16.mxu0 %v4884_v1 }
  0x40   :  { %3001 = vmatmul.mubr.msk.bf16.gmra.mrb[20].mxu1 %vm139_vm1, %v881_v7 }
  0x41   :  { %275 = vmatprep.mubr.bf16.mxu1 %v4884_v1 }
  0x42   :  { %3020 = vmatmul.mubr.msk.bf16.gmra.mrb[28].mxu0 %vm139_vm1, %v4038_v35 }
  0x43   :  { %508 = vmatprep.mubr.bf16.mxu0 %v4884_v1 }
  0x48   :  { %3002 = vmatmul.mubr.msk.bf16.gmra.mrb[24].mxu1 %vm139_vm1, %v882_v8 }
  0x49   :  { %285 = vmatprep.mubr.bf16.mxu1 %v4884_v1 }
  0x4a   :  { %3021 = vmatmul.mubr.msk.bf16.gmra.mrb[32].mxu0 %vm139_vm1, %v4057_v39 }
  0x4b   :  { %518 = vmatprep.mubr.bf16.mxu0 %v4884_v1 }
  0x50   :  { %3003 = vmatmul.mubr.msk.bf16.gmra.mrb[28].mxu1 %vm139_vm1, %v883_v9 }
  0x51   :  { %295 = vmatprep.mubr.bf16.mxu1 %v4884_v1 }
  0x52   :  { %3022 = vmatmul.mubr.msk.bf16.gmra.mrb[36].mxu0 %vm139_vm1, %v4074_v42 }
  0x53   :  { %528 = vmatprep.mubr.bf16.mxu0 %v4884_v1 }
  0x58   :  { %3004 = vmatmul.mubr.msk.bf16.gmra.mrb[32].mxu1 %vm139_vm1, %v884_v10 }
  0x59   :  { %305 = vmatprep.mubr.bf16.mxu1 %v4884_v1 }
  0x5a   :  { %3023 = vmatmul.mubr.msk.bf16.gmra.mrb[40].mxu0 %vm139_vm1, %v4091_v45 }
  0x5b   :  { %538 = vmatprep.mubr.bf16.mxu0 %v4884_v1 }
  0x60   :  { %3005 = vmatmul.mubr.msk.bf16.gmra.mrb[36].mxu1 %vm139_vm1, %v885_v11 }
  0x61   :  { %315 = vmatprep.mubr.bf16.mxu1 %v4884_v1 }
  0x62   :  { %3024 = vmatmul.mubr.msk.bf16.gmra.mrb[44].mxu0 %vm139_vm1, %v4108_v48 }
  0x63   :  { %683 = vmatprep.mubr.bf16.mxu0 %v4884_v1 }
  0x68   :  { %3006 = vmatmul.mubr.msk.bf16.gmra.mrb[40].mxu1 %vm139_vm1, %v886_v12 }
  0x69   :  { %325 = vmatprep.mubr.bf16.mxu1 %v4884_v1 }
  0x6a   :  { %3058 = vmatmul.mubr.msk.bf16.vlgmr.msra.gmra.mrb[0].mxu0 %vm139_vm1, %v64_v16  ;;  %v3732_v16 = vld [vmem:[%s4874_s3 + $0x58] ss:$8 sps:$4 sm:$0xff]  }
  0x6b   :  { %955 = vmatpush1.bf16.msra.mxu0 %v3711_v49  ;;  %693 = vmatprep.mubr.bf16.mxu0 %v4884_v1 }
  0x6c   :  { %3102 = vmatprep.subr.msk.bf16.mxu0 %vm176_vm0, %v3714_v50  ;;  %1683 = vmatpush1.bf16.msra.mxu1 %v3732_v16 }
  0x6f   :  { %957 = vmatpush1.bf16.msra.mxu0 %v949_v52 }
  0x70   :  { %1257 = vmatprep.subr.bf16.mxu0 %v3719_v53  ;;  %3007 = vmatmul.mubr.msk.bf16.gmra.mrb[44].mxu1 %vm139_vm1, %v887_v13 }
  0x71   :  { %1712 = vmatprep.mubr.bf16.mxu1 %v4884_v1 }
  0x72   :  { %3059 = vmatmul.mubr.msk.bf16.gmra.mrb[4].mxu0 %vm139_vm1, %v3953_v20 }
  0x73   :  { %703 = vmatprep.mubr.bf16.mxu0 %v4884_v1 }
  0x7a   :  { %3060 = vmatmul.mubr.msk.bf16.gmra.mrb[8].mxu0 %vm139_vm1, %v3970_v23 }
  0x7b   :  { %713 = vmatprep.mubr.bf16.mxu0 %v4884_v1 }
  0x82   :  { %3061 = vmatmul.mubr.msk.bf16.gmra.mrb[12].mxu0 %vm139_vm1, %v3987_v26 }
  0x83   :  { %723 = vmatprep.mubr.bf16.mxu0 %v4884_v1 }
  0x8a   :  { %3062 = vmatmul.mubr.msk.bf16.gmra.mrb[16].mxu0 %vm139_vm1, %v4004_v29 }
  0x8b   :  { %733 = vmatprep.mubr.bf16.mxu0 %v4884_v1 }
  0x92   :  { %3063 = vmatmul.mubr.msk.bf16.gmra.mrb[20].mxu0 %vm139_vm1, %v4021_v32 }
  0x93   :  { %743 = vmatprep.mubr.bf16.mxu0 %v4884_v1 }
  0x9a   :  { %3064 = vmatmul.mubr.msk.bf16.gmra.mrb[24].mxu0 %vm139_vm1, %v4038_v35 }
  0x9b   :  { %753 = vmatprep.mubr.bf16.mxu0 %v4884_v1 }
  0xa2   :  { %3065 = vmatmul.mubr.msk.bf16.gmra.mrb[28].mxu0 %vm139_vm1, %v4057_v39 }
  0xa3   :  { %763 = vmatprep.mubr.bf16.mxu0 %v4884_v1 }
  0xaa   :  { %3066 = vmatmul.mubr.msk.bf16.gmra.mrb[32].mxu0 %vm139_vm1, %v4074_v42 }
  0xab   :  { %773 = vmatprep.mubr.bf16.mxu0 %v4884_v1 }
  0xb2   :  { %3067 = vmatmul.mubr.msk.bf16.gmra.mrb[36].mxu0 %vm139_vm1, %v4091_v45 }
  0xb3   :  { %783 = vmatprep.mubr.bf16.mxu0 %v4884_v1 }
  0xba   :  { %3068 = vmatmul.mubr.msk.bf16.gmra.mrb[40].mxu0 %vm139_vm1, %v4108_v48 }
  0xbb   :  { %793 = vmatprep.mubr.bf16.mxu0 %v4884_v1 }
  0xc2   :  { %3069 = vmatmul.mubr.msk.bf16.gmra.mrb[44].mxu0 %vm139_vm1, %v4195_v0 }
  0xc3   :  { %986 = vmatprep.mubr.bf16.mxu0 %v4884_v1 }
  0xca   :  { %3103 = vmatmul.mubr.msk.bf16.vlgmr.msra.gmra.mrb[0].mxu0 %vm139_vm1, %v4053_v38 }
  0xcb   :  { %1258 = vmatpush1.bf16.msra.mxu0 %v3717_v3  ;;  %996 = vmatprep.mubr.bf16.mxu0 %v4884_v1  ;;  %v3745_v3 = vld [vmem:[%s4874_s3 + $0x4] ss:$8 sps:$4 sm:$0xff]  }
  0xcc   :  { %3147 = vmatprep.subr.msk.bf16.mxu0 %vm176_vm0, %v3720_v4 }
  0xcf   :  { %1260 = vmatpush1.bf16.msra.mxu0 %v1252_v6 }
  0xd2   :  { %3104 = vmatmul.mubr.msk.bf16.gmra.mrb[4].mxu0 %vm139_vm1, %v878_v60 }
  0xd3   :  { %1006 = vmatprep.mubr.bf16.mxu0 %v4884_v1 }
  0xda   :  { %3105 = vmatmul.mubr.msk.bf16.gmra.mrb[8].mxu0 %vm139_vm1, %v879_v63 }
  0xdb   :  { %1016 = vmatprep.mubr.bf16.mxu0 %v4884_v1 }
  0xe2   :  { %3106 = vmatmul.mubr.msk.bf16.gmra.mrb[12].mxu0 %vm139_vm1, %v880_v2 }
  0xe3   :  { %1026 = vmatprep.mubr.bf16.mxu0 %v4884_v1 }
  0xea   :  { %3107 = vmatmul.mubr.msk.bf16.gmra.mrb[16].mxu0 %vm139_vm1, %v881_v7 }
  0xeb   :  { %1036 = vmatprep.mubr.bf16.mxu0 %v4884_v1 }
  0xf2   :  { %3108 = vmatmul.mubr.msk.bf16.gmra.mrb[20].mxu0 %vm139_vm1, %v882_v8 }
  0xf3   :  { %1046 = vmatprep.mubr.bf16.mxu0 %v4884_v1 }
  0xfa   :  { %3109 = vmatmul.mubr.msk.bf16.gmra.mrb[24].mxu0 %vm139_vm1, %v883_v9 }
  0xfb   :  { %1056 = vmatprep.mubr.bf16.mxu0 %v4884_v1 }
 0x102   :  { %3110 = vmatmul.mubr.msk.bf16.gmra.mrb[28].mxu0 %vm139_vm1, %v884_v10 }
 0x103   :  { %1066 = vmatprep.mubr.bf16.mxu0 %v4884_v1 }
 0x10a   :  { %3111 = vmatmul.mubr.msk.bf16.gmra.mrb[32].mxu0 %vm139_vm1, %v885_v11 }
 0x10b   :  { %1076 = vmatprep.mubr.bf16.mxu0 %v4884_v1 }
 0x112   :  { %3112 = vmatmul.mubr.msk.bf16.gmra.mrb[36].mxu0 %vm139_vm1, %v886_v12 }
 0x113   :  { %1086 = vmatprep.mubr.bf16.mxu0 %v4884_v1 }
 0x11a   :  { %3113 = vmatmul.mubr.msk.bf16.gmra.mrb[40].mxu0 %vm139_vm1, %v887_v13 }
 0x11b   :  { %1096 = vmatprep.mubr.bf16.mxu0 %v4884_v1 }
 0x122   :  { %3114 = vmatmul.mubr.msk.bf16.gmra.mrb[44].mxu0 %vm139_vm1, %v888_v19 }
 0x123   :  { %1289 = vmatprep.mubr.bf16.mxu0 %v4884_v1 }
 0x12a   :  { %3148 = vmatmul.mubr.msk.bf16.vlgmr.msra.gmra.mrb[0].mxu0 %vm139_vm1, %v3953_v20  ;;  %v4317_v20 = vpop.f32.mrb[0].mxu1 }
 0x12b   :  { %1299 = vmatprep.mubr.bf16.mxu0 %v4884_v1  ;;  %v4323_v22 = vpop.f32.mrb[1].mxu1 }
 0x132   :  { %3149 = vmatmul.mubr.msk.bf16.gmra.mrb[4].mxu0 %vm139_vm1, %v3970_v23  ;;  %v4325_v23 = vpop.f32.mrb[2].mxu1 }
 0x133   :  { %1309 = vmatprep.mubr.bf16.mxu0 %v4884_v1  ;;  %v4327_v24 = vpop.f32.mrb[3].mxu1 }
 0x13a   :  { %3150 = vmatmul.mubr.msk.bf16.gmra.mrb[8].mxu0 %vm139_vm1, %v3987_v26  ;;  %v4330_v26 = vpop.f32.mrb[4].mxu1 }
 0x13b   :  { %1319 = vmatprep.mubr.bf16.mxu0 %v4884_v1  ;;  %v4332_v27 = vpop.f32.mrb[5].mxu1 }
 0x13c   :  { %v4334_v28 = vpop.f32.mrb[6].mxu1 }
 0x142   :  { %3151 = vmatmul.mubr.msk.bf16.gmra.mrb[12].mxu0 %vm139_vm1, %v4004_v29  ;;  %v4336_v29 = vpop.f32.mrb[7].mxu1 }
 0x143   :  { %1329 = vmatprep.mubr.bf16.mxu0 %v4884_v1  ;;  %v4338_v30 = vpop.f32.mrb[8].mxu1 }
 0x144   :  { %v4346_v33 = vpop.f32.mrb[9].mxu1 }
 0x145   :  { %v4348_v34 = vpop.f32.mrb[10].mxu1 }
 0x14a   :  { %3152 = vmatmul.mubr.msk.bf16.gmra.mrb[16].mxu0 %vm139_vm1, %v4021_v32  ;;  %v3737_v32 = vld [vmem:[%s4874_s3 + $0x6c] ss:$8 sps:$4 sm:$0xff]  }
 0x14b   :  { %1339 = vmatprep.mubr.bf16.mxu0 %v4884_v1  ;;  %1684 = vmatprep.subr.bf16.mxu1 %v3737_v32 }
 0x14c   :  { %1685 = vmatpush1.bf16.msra.mxu1 %v3735_v31 }
 0x14d   :  { %1686 = vmatprep.subr.bf16.mxu1 %v3740_v41 }
 0x150   :  { %1687 = vmatpush1.bf16.msra.mxu1 %v3738_v43 }
 0x151   :  { %3180 = vmatprep.subr.msk.bf16.mxu1 %vm1673_vm2, %v3179_v47 }
 0x152   :  { %3153 = vmatmul.mubr.msk.bf16.gmra.mrb[20].mxu0 %vm139_vm1, %v4038_v35  ;;  %v4350_v35 = vpop.f32.mrb[11].mxu1 }
 0x153   :  { %1349 = vmatprep.mubr.bf16.mxu0 %v4884_v1  ;;  %v4352_v36 = vpop.f32.mrb[12].mxu1 }
 0x154   :  { %v4354_v37 = vpop.f32.mrb[13].mxu1 }
 0x155   :  { %v4356_v38 = vpop.f32.mrb[14].mxu1 }
 0x15a   :  { %3154 = vmatmul.mubr.msk.bf16.gmra.mrb[24].mxu0 %vm139_vm1, %v4057_v39  ;;  %v4358_v39 = vpop.f32.mrb[15].mxu1 }
 0x15b   :  { %1359 = vmatprep.mubr.bf16.mxu0 %v4884_v1  ;;  %v4360_v40 = vpop.f32.mrb[16].mxu1 }
 0x162   :  { %3155 = vmatmul.mubr.msk.bf16.gmra.mrb[28].mxu0 %vm139_vm1, %v4074_v42  ;;  %v4365_v42 = vpop.f32.mrb[17].mxu1 }
 0x163   :  { %1369 = vmatprep.mubr.bf16.mxu0 %v4884_v1  ;;  %v4370_v44 = vpop.f32.mrb[18].mxu1 }
 0x16a   :  { %3156 = vmatmul.mubr.msk.bf16.gmra.mrb[32].mxu0 %vm139_vm1, %v4091_v45  ;;  %v4372_v45 = vpop.f32.mrb[19].mxu1 }
 0x16b   :  { %1379 = vmatprep.mubr.bf16.mxu0 %v4884_v1  ;;  %v4379_v50 = vpop.f32.mrb[20].mxu1 }
 0x16c   :  { %v4381_v51 = vpop.f32.mrb[21].mxu1 }
 0x16d   :  { %v4383_v52 = vpop.f32.mrb[22].mxu1 }
 0x16e   :  { %v4385_v53 = vpop.f32.mrb[23].mxu1 }
 0x16f   :  { %v4387_v54 = vpop.f32.mrb[24].mxu1 }
 0x170   :  { %v4389_v55 = vpop.f32.mrb[25].mxu1 }
 0x171   :  { %v4391_v56 = vpop.f32.mrb[26].mxu1 }
 0x172   :  { %3157 = vmatmul.mubr.msk.bf16.gmra.mrb[36].mxu0 %vm139_vm1, %v4108_v48  ;;  %v3178_v48 = vcombine.low %v3169_v46, %v3169_v46  ;;  %v4393_v57 = vpop.f32.mrb[27].mxu1 }
 0x173   :  { %1389 = vmatprep.mubr.bf16.mxu0 %v4884_v1  ;;  %v4395_v58 = vpop.f32.mrb[28].mxu1 }
 0x174   :  { %v1675_v49 = vsel %vm1673_vm2, %v3178_v48, 0  ;;  %v4397_v59 = vpop.f32.mrb[29].mxu1 }
 0x175   :  { %1689 = vmatpush1.bf16.msra.mxu1 %v1675_v49  ;;  %v4399_v60 = vpop.f32.mrb[30].mxu1 }
 0x176   :  { %v4401_v61 = vpop.f32.mrb[31].mxu1  ;;  %1816 = vmatprep.subr.bf16.mxu1 %v3745_v3 }
 0x177   :  { %v4403_v62 = vpop.f32.mrb[32].mxu1 }
 0x178   :  { %v4405_v63 = vpop.f32.mrb[33].mxu1 }
 0x17a   :  { %3158 = vmatmul.mubr.msk.bf16.gmra.mrb[40].mxu0 %vm139_vm1, %v4195_v0  ;;  %v4407_v0 = vpop.f32.mrb[34].mxu1 }
 0x17b   :  { %1399 = vmatprep.mubr.bf16.mxu0 %v4884_v1  ;;  %v4409_v2 = vpop.f32.mrb[35].mxu1 }
 0x17c   :  { %v4414_v4 = vpop.f32.mrb[36].mxu1 }
 0x17d   :  { %v4416_v5 = vpop.f32.mrb[37].mxu1 }
 0x17e   :  { %v4418_v6 = vpop.f32.mrb[38].mxu1 }
 0x17f   :  { %v4420_v7 = vpop.f32.mrb[39].mxu1 }
 0x180   :  { %v4422_v8 = vpop.f32.mrb[40].mxu1 }
 0x181   :  { %v4424_v9 = vpop.f32.mrb[41].mxu1 }
 0x182   :  { %3159 = vmatmul.mubr.msk.bf16.gmra.mrb[44].mxu0 %vm139_vm1, %v1191_v25  ;;  %v4426_v10 = vpop.f32.mrb[42].mxu1  ;;  %v4443_v25 = vld [vmem:[%s4875_s2] ss:$0 sm:$0xff] }
 0x183   :  { %v4428_v11 = vpop.f32.mrb[43].mxu1 }
 0x184   :  { %v4430_v12 = vpop.f32.mrb[44].mxu1 }
 0x185   :  { %v4432_v13 = vpop.f32.mrb[45].mxu1 }
 0x186   :  { %v4434_v14 = vpop.f32.mrb[46].mxu1 }
 0x187   :  { %v4436_v15 = vpop.f32.mrb[47].mxu1 }
 0x1fd   :  { %v1291_v16 = vpop.f32.mrb[0].mxu0 }
 0x1fe   :  { %v3440_v17 = vadd.f32 %v1291_v16, %v4317_v20  ;;  %v1293_v18 = vpop.f32.mrb[1].mxu0 }
 0x1ff   :  { %v3441_v19 = vadd.f32 %v1293_v18, %v4323_v22  ;;  %v1295_v21 = vpop.f32.mrb[2].mxu0 }
 0x200   :  { %v3442_v31 = vadd.f32 %v1295_v21, %v4325_v23  ;;  %v1297_v32 = vpop.f32.mrb[3].mxu0 }
 0x201   :  { %v1458_v41 = vmax.f32 %v3440_v17, %v3441_v19  ;;  %v3443_v43 = vadd.f32 %v1297_v32, %v4327_v24 }
 0x203   :  { %v1489_v46 = vadd.f32 %v4443_v25, %v1458_v41  ;;  %v1459_v47 = vmax.f32 %v3442_v31, %v3443_v43 }
 0x205   :  { %v1490_v20 = vadd.f32 %v4443_v25, %v1459_v47  ;;  %v1301_v48 = vpop.f32.mrb[4].mxu0  ;;  %v1513_v3 = vmax.f32 %v1489_v46, 0.0 }
 0x206   :  { %v3444_v22 = vadd.f32 %v1301_v48, %v4330_v26  ;;  %v1303_v49 = vpop.f32.mrb[5].mxu0 }
 0x207   :  { %v1514_v16 = vmax.f32 %v1490_v20, 0.0  ;;  %v3445_v18 = vadd.f32 %v1303_v49, %v4332_v27  ;;  %v1305_v1 = vpop.f32.mrb[6].mxu0 }
 0x208   :  { %v3446_v23 = vadd.f32 %v1305_v1, %v4334_v28  ;;  %v1307_v17 = vpop.f32.mrb[7].mxu0 }
 0x209   :  { %v1537_v19 = vmax.f32 %v1513_v3, %v1514_v16  ;;  %v1460_v24 = vmax.f32 %v3444_v22, %v3445_v18  ;;  %v3447_v21 = vadd.f32 %v1307_v17, %v4336_v29 }
 0x20b   :  { %1539 = vst.msk [vmem:[#allocation2] sm:$0xff] %vm1538_vm3, %v1537_v19  ;;  %v1491_v31 = vadd.f32 %v4443_v25, %v1460_v24  ;;  %v1461_v32 = vmax.f32 %v3446_v23, %v3447_v21 }
 0x20d   :  { %v1492_v26 = vadd.f32 %v4443_v25, %v1461_v32  ;;  %v1311_v41 = vpop.f32.mrb[8].mxu0  ;;  %v1515_v46 = vmax.f32 %v1491_v31, 0.0 }
 0x20e   :  { %v3448_v43 = vadd.f32 %v1311_v41, %v4338_v30  ;;  %v1313_v27 = vpop.f32.mrb[9].mxu0 }
 0x20f   :  { %v1516_v47 = vmax.f32 %v1492_v26, 0.0  ;;  %v3449_v1 = vadd.f32 %v1313_v27, %v4346_v33  ;;  %v1315_v28 = vpop.f32.mrb[10].mxu0 }
 0x210   :  { %v3450_v20 = vadd.f32 %v1315_v28, %v4348_v34  ;;  %v1317_v48 = vpop.f32.mrb[11].mxu0 }
 0x211   :  { %v1540_v29 = vmax.f32 %v1515_v46, %v1516_v47  ;;  %v1462_v22 = vmax.f32 %v3448_v43, %v3449_v1  ;;  %v3451_v49 = vadd.f32 %v1317_v48, %v4350_v35 }
 0x213   :  { %1542 = vst.msk [vmem:[#allocation2 + $0x8] sm:$0xff] %vm1538_vm3, %v1540_v29  ;;  %v1493_v3 = vadd.f32 %v4443_v25, %v1462_v22  ;;  %v1463_v16 = vmax.f32 %v3450_v20, %v3451_v49 }
 0x215   :  { %v1494_v30 = vadd.f32 %v4443_v25, %v1463_v16  ;;  %v1321_v18 = vpop.f32.mrb[12].mxu0  ;;  %v1517_v33 = vmax.f32 %v1493_v3, 0.0 }
 0x216   :  { %v3452_v23 = vadd.f32 %v1321_v18, %v4352_v36  ;;  %v1323_v17 = vpop.f32.mrb[13].mxu0 }
 0x217   :  { %v1518_v19 = vmax.f32 %v1494_v30, 0.0  ;;  %v3453_v34 = vadd.f32 %v1323_v17, %v4354_v37  ;;  %v1325_v24 = vpop.f32.mrb[14].mxu0 }
 0x218   :  { %v3454_v21 = vadd.f32 %v1325_v24, %v4356_v38  ;;  %v1327_v31 = vpop.f32.mrb[15].mxu0 }
 0x219   :  { %v1543_v35 = vmax.f32 %v1517_v33, %v1518_v19  ;;  %v1464_v32 = vmax.f32 %v3452_v23, %v3453_v34  ;;  %v3455_v26 = vadd.f32 %v1327_v31, %v4358_v39  ;;  %v4886_v33 = vmov 0   ;;  %v3746_v19 = vld [vmem:[%s4874_s3 + $0x10] ss:$8 sps:$4 sm:$0xff]  }
 0x21a   :  { %v4474_v49 = vld [vmem:[#allocation2 + $0x8] sm:$0xff] }
 0x21b   :  { %1545 = vst.msk [vmem:[#allocation2 + $0x10] sm:$0xff] %vm1538_vm3, %v1543_v35  ;;  %v1495_v41 = vadd.f32 %v4443_v25, %v1464_v32  ;;  %v1465_v43 = vmax.f32 %v3454_v21, %v3455_v26  ;;  %v3751_v35 = vld [vmem:[%s4874_s3 + $0x24] ss:$8 sps:$4 sm:$0xff]  }
 0x21d   :  { %v1496_v36 = vadd.f32 %v4443_v25, %v1465_v43  ;;  %v1331_v27 = vpop.f32.mrb[16].mxu0  ;;  %v1519_v37 = vmax.f32 %v1495_v41, 0.0 }
 0x21e   :  { %v3456_v46 = vadd.f32 %v1331_v27, %v4360_v40  ;;  %v1333_v47 = vpop.f32.mrb[17].mxu0  ;;  %v3743_v40 = vld [vmem:[%s4874_s3] ss:$8 sps:$4 sm:$0xff]  }
 0x21f   :  { %v1520_v1 = vmax.f32 %v1496_v36, 0.0  ;;  %v3457_v38 = vadd.f32 %v1333_v47, %v4365_v42  ;;  %v1335_v28 = vpop.f32.mrb[18].mxu0  ;;  %v3749_v36 = vld [vmem:[%s4874_s3 + $0x20] ss:$8 sps:$4 sm:$0xff]  }
 0x220   :  { %v3458_v20 = vadd.f32 %v1335_v28, %v4370_v44  ;;  %v1337_v48 = vpop.f32.mrb[19].mxu0 }
 0x221   :  { %v1546_v39 = vmax.f32 %v1519_v37, %v1520_v1  ;;  %v1466_v29 = vmax.f32 %v3456_v46, %v3457_v38  ;;  %v3459_v22 = vadd.f32 %v1337_v48, %v4372_v45  ;;  %v3748_v45 = vld [vmem:[%s4874_s3 + $0x14] ss:$8 sps:$4 sm:$0xff]   ;;  %v1593_v46 = vld [vmem:[%s4874_s3 + $0x40] sm:$0xff]  ;;  %v3752_v38 = vld [vmem:[%s4874_s3 + $0x30] ss:$8 sps:$4 sm:$0xff]  }
 0x222   :  { %v4476_v3 = vld [vmem:[#allocation2 + $0x10] sm:$0xff]  ;;  %v3194_v28 = vcombine.high %v1593_v46, %v1593_v46 }
 0x223   :  { %1548 = vst.msk [vmem:[#allocation2 + $0x18] sm:$0xff] %vm1538_vm3, %v1546_v39  ;;  %v1497_v42 = vadd.f32 %v4443_v25, %v1466_v29  ;;  %v1467_v16 = vmax.f32 %v3458_v20, %v3459_v22  ;;  %v1602_v44 = vpack.c.bf16 %v4476_v3, %v4474_v49  ;;  %v3193_v22 = vcombine.low %v1593_v46, %v1593_v46 }
 0x225   :  { %v1498_v30 = vadd.f32 %v4443_v25, %v1467_v16  ;;  %v1341_v18 = vpop.f32.mrb[20].mxu0  ;;  %3181 = vmatmul.mubr.msk.bf16.vlgmr.msra.gmra.mrb[48].mxu1 %vm1538_vm3, %v1602_v44  ;;  %v1521_v34 = vmax.f32 %v1497_v42, 0.0 }
 0x226   :  { %v3460_v23 = vadd.f32 %v1341_v18, %v4379_v50  ;;  %v1343_v17 = vpop.f32.mrb[21].mxu0  ;;  %1722 = vmatprep.mubr.bf16.mxu1 %v4886_v33  ;;  %1817 = vmatpush1.bf16.msra.mxu1 %v3743_v40 }
 0x227   :  { %v1522_v24 = vmax.f32 %v1498_v30, 0.0  ;;  %v3461_v21 = vadd.f32 %v1343_v17, %v4381_v51  ;;  %v1345_v31 = vpop.f32.mrb[22].mxu0  ;;  %1818 = vmatprep.subr.bf16.mxu1 %v3748_v45 }
 0x228   :  { %v3462_v50 = vadd.f32 %v1345_v31, %v4383_v52  ;;  %v1347_v32 = vpop.f32.mrb[23].mxu0  ;;  %v3754_v52 = vld [vmem:[%s4874_s3 + $0x34] ss:$8 sps:$4 sm:$0xff]  }
 0x229   :  { %v1549_v26 = vmax.f32 %v1521_v34, %v1522_v24  ;;  %v1468_v41 = vmax.f32 %v3460_v23, %v3461_v21  ;;  %v3463_v43 = vadd.f32 %v1347_v32, %v4385_v53 }
 0x22a   :  { %1819 = vmatpush1.bf16.msra.mxu1 %v3746_v19  ;;  %v4520_v45 = vld [vmem:[#allocation2 + $0x18] sm:$0xff] }
 0x22b   :  { %1551 = vst.msk [vmem:[#allocation2 + $0x20] sm:$0xff] %vm1538_vm3, %v1549_v26  ;;  %v1499_v51 = vadd.f32 %v4443_v25, %v1468_v41  ;;  %v1469_v27 = vmax.f32 %v3462_v50, %v3463_v43  ;;  %1820 = vmatprep.subr.bf16.mxu1 %v3751_v35 }
 0x22d   :  { %v1500_v53 = vadd.f32 %v4443_v25, %v1469_v27  ;;  %v1351_v47 = vpop.f32.mrb[24].mxu0  ;;  %v1523_v20 = vmax.f32 %v1499_v51, 0.0 }
 0x22e   :  { %v3464_v37 = vadd.f32 %v1351_v47, %v4387_v54  ;;  %v1353_v1 = vpop.f32.mrb[25].mxu0  ;;  %1821 = vmatpush1.bf16.msra.mxu1 %v3749_v36 }
 0x22f   :  { %v1524_v48 = vmax.f32 %v1500_v53, 0.0  ;;  %v3465_v39 = vadd.f32 %v1353_v1, %v4389_v55  ;;  %v1355_v29 = vpop.f32.mrb[26].mxu0  ;;  %1822 = vmatprep.subr.bf16.mxu1 %v3754_v52 }
 0x230   :  { %v3466_v40 = vadd.f32 %v1355_v29, %v4391_v56  ;;  %v1357_v42 = vpop.f32.mrb[27].mxu0  ;;  %v1811_v56 = vsel %vm1673_vm2, %v3193_v22, 0 }
 0x231   :  { %v1552_v16 = vmax.f32 %v1523_v20, %v1524_v48  ;;  %v1470_v44 = vmax.f32 %v3464_v37, %v3465_v39  ;;  %v3467_v54 = vadd.f32 %v1357_v42, %v4393_v57  ;;  %v3758_v57 = vld [vmem:[%s4874_s3 + $0x94] ss:$8 sps:$4 sm:$0xff]  }
 0x232   :  { %v4522_v30 = vld [vmem:[#allocation2 + $0x20] sm:$0xff]  ;;  %1823 = vmatpush1.bf16.msra.mxu1 %v3752_v38 }
 0x233   :  { %1554 = vst.msk [vmem:[#allocation2 + $0x28] sm:$0xff] %vm1538_vm3, %v1552_v16  ;;  %v1501_v18 = vadd.f32 %v4443_v25, %v1470_v44  ;;  %v1471_v55 = vmax.f32 %v3466_v40, %v3467_v54  ;;  %v4528_v23 = vpack.c.bf16 %v4522_v30, %v4520_v45  ;;  %3195 = vmatprep.subr.msk.bf16.mxu1 %vm1673_vm2, %v3194_v28 }
 0x235   :  { %v1502_v17 = vadd.f32 %v4443_v25, %v1471_v55  ;;  %v1361_v19 = vpop.f32.mrb[28].mxu0  ;;  %3182 = vmatmul.mubr.msk.bf16.gmra.mrb[52].mxu1 %vm1538_vm3, %v4528_v23  ;;  %v1525_v21 = vmax.f32 %v1501_v18, 0.0 }
 0x236   :  { %v3468_v34 = vadd.f32 %v1361_v19, %v4395_v58  ;;  %v1363_v24 = vpop.f32.mrb[29].mxu0  ;;  %1732 = vmatprep.mubr.bf16.mxu1 %v4886_v33  ;;  %1825 = vmatpush1.bf16.msra.mxu1 %v1811_v56 }
 0x237   :  { %v1526_v31 = vmax.f32 %v1502_v17, 0.0  ;;  %v3469_v35 = vadd.f32 %v1363_v24, %v4397_v59  ;;  %v1365_v50 = vpop.f32.mrb[30].mxu0  ;;  %1974 = vmatprep.subr.bf16.mxu1 %v3758_v57 }
 0x238   :  { %v3470_v32 = vadd.f32 %v1365_v50, %v4399_v60  ;;  %v1367_v26 = vpop.f32.mrb[31].mxu0 }
 0x239   :  { %v1555_v41 = vmax.f32 %v1525_v21, %v1526_v31  ;;  %v1472_v43 = vmax.f32 %v3468_v34, %v3469_v35  ;;  %v3471_v36 = vadd.f32 %v1367_v26, %v4401_v61 }
 0x23a   :  { %v4550_v48 = vld [vmem:[#allocation2 + $0x28] sm:$0xff] }
 0x23b   :  { %1557 = vst.msk [vmem:[#allocation2 + $0x30] sm:$0xff] %vm1538_vm3, %v1555_v41  ;;  %v1503_v58 = vadd.f32 %v4443_v25, %v1472_v43  ;;  %v1473_v51 = vmax.f32 %v3470_v32, %v3471_v36 }
 0x23d   :  { %v1504_v27 = vadd.f32 %v4443_v25, %v1473_v51  ;;  %v1371_v52 = vpop.f32.mrb[32].mxu0  ;;  %v1527_v53 = vmax.f32 %v1503_v58, 0.0 }
 0x23e   :  { %v3472_v46 = vadd.f32 %v1371_v52, %v4403_v62  ;;  %v1373_v59 = vpop.f32.mrb[33].mxu0 }
 0x23f   :  { %v1528_v47 = vmax.f32 %v1504_v27, 0.0  ;;  %v3473_v60 = vadd.f32 %v1373_v59, %v4405_v63  ;;  %v1375_v37 = vpop.f32.mrb[34].mxu0 }
 0x240   :  { %v3474_v1 = vadd.f32 %v1375_v37, %v4407_v0  ;;  %v1377_v38 = vpop.f32.mrb[35].mxu0 }
 0x241   :  { %v1558_v61 = vmax.f32 %v1527_v53, %v1528_v47  ;;  %v1474_v28 = vmax.f32 %v3472_v46, %v3473_v60  ;;  %v3475_v20 = vadd.f32 %v1377_v38, %v4409_v2 }
 0x242   :  { %v4552_v39 = vld [vmem:[#allocation2 + $0x30] sm:$0xff] }
 0x243   :  { %1560 = vst.msk [vmem:[#allocation2 + $0x38] sm:$0xff] %vm1538_vm3, %v1558_v61  ;;  %v1505_v62 = vadd.f32 %v4443_v25, %v1474_v28  ;;  %v1475_v29 = vmax.f32 %v3474_v1, %v3475_v20  ;;  %v4558_v63 = vpack.c.bf16 %v4552_v39, %v4550_v48  ;;  %v3756_v1 = vld [vmem:[%s4874_s3 + $0x90] ss:$8 sps:$4 sm:$0xff]   ;;  %v1573_v20 = vld [vmem:[#allocation2] sm:$0xff] }
 0x245   :  { %v1506_v0 = vadd.f32 %v4443_v25, %v1475_v29  ;;  %v1381_v22 = vpop.f32.mrb[36].mxu0  ;;  %3183 = vmatmul.mubr.msk.bf16.gmra.mrb[56].mxu1 %vm1538_vm3, %v4558_v63  ;;  %v1529_v42 = vmax.f32 %v1505_v62, 0.0  ;;  %v3759_v29 = vld [vmem:[%s4874_s3 + $0xa0] ss:$8 sps:$4 sm:$0xff]  }
 0x246   :  { %v3476_v2 = vadd.f32 %v1381_v22, %v4414_v4  ;;  %v1383_v40 = vpop.f32.mrb[37].mxu0  ;;  %1742 = vmatprep.mubr.bf16.mxu1 %v4886_v33 }
 0x247   :  { %v1530_v16 = vmax.f32 %v1506_v0, 0.0  ;;  %v3477_v44 = vadd.f32 %v1383_v40, %v4416_v5  ;;  %v1385_v54 = vpop.f32.mrb[38].mxu0 }
 0x248   :  { %v3478_v18 = vadd.f32 %v1385_v54, %v4418_v6  ;;  %v1387_v55 = vpop.f32.mrb[39].mxu0  ;;  %v4627_v54 = vpack.c.bf16 %v4550_v48, %v4522_v30  ;;  %v3770_v30 = vld [vmem:[%s4874_s3 + $0xd8] ss:$8 sps:$4 sm:$0xff]   ;;  %v3775_v48 = vld [vmem:[%s4874_s3 + $0xec] ss:$8 sps:$4 sm:$0xff]  }
 0x249   :  { %v1561_v56 = vmax.f32 %v1529_v42, %v1530_v16  ;;  %v1476_v57 = vmax.f32 %v3476_v2, %v3477_v44  ;;  %v3479_v17 = vadd.f32 %v1387_v55, %v4420_v7  ;;  %v3767_v42 = vld [vmem:[%s4874_s3 + $0xc4] ss:$8 sps:$4 sm:$0xff]   ;;  %v3208_v16 = vld [vmem:[%s4874_s3 + $0xd0] sm:$0xff]  ;;  %v3765_v44 = vld [vmem:[%s4874_s3 + $0xc0] ss:$8 sps:$4 sm:$0xff]  }
 0x24a   :  { %v1600_v36 = vld [vmem:[#allocation2 + $0x38] sm:$0xff] }
 0x24b   :  { %1563 = vst.msk [vmem:[#allocation2 + $0x40] sm:$0xff] %vm1538_vm3, %v1561_v56  ;;  %v1507_v19 = vadd.f32 %v4443_v25, %v1476_v57  ;;  %v1477_v4 = vmax.f32 %v3478_v18, %v3479_v17  ;;  %v3772_v55 = vld [vmem:[%s4874_s3 + $0xdc] ss:$8 sps:$4 sm:$0xff]   ;;  %v4638_v56 = vpack.c.bf16 %v1600_v36, %v4552_v39  ;;  %v3773_v39 = vld [vmem:[%s4874_s3 + $0xe8] ss:$8 sps:$4 sm:$0xff]  }
 0x24c   :  { %v3778_v57 = vld [vmem:[%s4874_s3 + $0xfc] ss:$8 sps:$4 sm:$0xff]   ;;  %v3776_v17 = vld [vmem:[%s4874_s3 + $0xf8] ss:$8 sps:$4 sm:$0xff]  }
 0x24d   :  { %v1508_v34 = vadd.f32 %v4443_v25, %v1477_v4  ;;  %v1391_v24 = vpop.f32.mrb[40].mxu0  ;;  %v1531_v5 = vmax.f32 %v1507_v19, 0.0  ;;  %v3781_v19 = vld [vmem:[%s4874_s3 + $0x10c] ss:$8 sps:$4 sm:$0xff]   ;;  %v3232_v4 = vld [vmem:[%s4874_s3 + $0x118] sm:$0xff] }
 0x24e   :  { %v3480_v21 = vadd.f32 %v1391_v24, %v4422_v8  ;;  %v1393_v31 = vpop.f32.mrb[41].mxu0  ;;  %v3242_v24 = vcombine.high %v3232_v4, %v3232_v4 }
 0x24f   :  { %v1532_v35 = vmax.f32 %v1508_v34, 0.0  ;;  %v3481_v6 = vadd.f32 %v1393_v31, %v4424_v9  ;;  %v1395_v50 = vpop.f32.mrb[42].mxu0  ;;  %v3779_v34 = vld [vmem:[%s4874_s3 + $0x108] ss:$8 sps:$4 sm:$0xff]  }
 0x250   :  { %v3482_v32 = vadd.f32 %v1395_v50, %v4426_v10  ;;  %v1397_v26 = vpop.f32.mrb[43].mxu0  ;;  %v3784_v50 = vld [vmem:[%s4874_s3 + $0x120] ss:$8 sps:$4 sm:$0xff]  }
 0x251   :  { %v1564_v7 = vmax.f32 %v1531_v5, %v1532_v35  ;;  %v1478_v41 = vmax.f32 %v3480_v21, %v3481_v6  ;;  %v3483_v43 = vadd.f32 %v1397_v26, %v4428_v11  ;;  %v3241_v21 = vcombine.low %v3232_v4, %v3232_v4  ;;  %v3786_v5 = vld [vmem:[%s4874_s3 + $0x124] ss:$8 sps:$4 sm:$0xff]   ;;  %v3787_v26 = vld [vmem:[%s4874_s3 + $0x130] ss:$8 sps:$4 sm:$0xff]  }
 0x252   :  { %v4575_v58 = vld [vmem:[#allocation2 + $0x40] sm:$0xff] }
 0x253   :  { %1566 = vst.msk [vmem:[#allocation2 + $0x48] sm:$0xff] %vm1538_vm3, %v1564_v7  ;;  %v1509_v8 = vadd.f32 %v4443_v25, %v1478_v41  ;;  %v1479_v51 = vmax.f32 %v3482_v32, %v3483_v43  ;;  %v4580_v27 = vpack.c.bf16 %v4575_v58, %v1600_v36  ;;  %v2143_v31 = vsel %vm1673_vm2, %v3241_v21, 0  ;;  %v3789_v32 = vld [vmem:[%s4874_s3 + $0x134] ss:$8 sps:$4 sm:$0xff]   ;;  %v3792_v7 = vld [vmem:[%s4874_s3 + $0x144] ss:$8 sps:$4 sm:$0xff]  }
 0x254   :  { %v3790_v41 = vld [vmem:[%s4874_s3 + $0x140] ss:$8 sps:$4 sm:$0xff]   ;;  %v3793_v36 = vld [vmem:[%s4874_s3 + $0x150] ss:$8 sps:$4 sm:$0xff]  }
 0x255   :  { %v1510_v9 = vadd.f32 %v4443_v25, %v1479_v51  ;;  %v1401_v52 = vpop.f32.mrb[44].mxu0  ;;  %3184 = vmatmul.mubr.msk.bf16.gmra.mrb[60].mxu1 %vm1538_vm3, %v4580_v27  ;;  %v1533_v10 = vmax.f32 %v1509_v8, 0.0  ;;  %v3256_v43 = vld [vmem:[%s4874_s3 + $0x160] sm:$0xff] }
 0x256   :  { %v3484_v11 = vadd.f32 %v1401_v52, %v4430_v12  ;;  %v1403_v46 = vpop.f32.mrb[45].mxu0  ;;  %1848 = vmatprep.mubr.bf16.mxu1 %v4886_v33  ;;  %v3761_v12 = vld [vmem:[%s4874_s3 + $0xa4] ss:$8 sps:$4 sm:$0xff]   ;;  %v3265_v8 = vcombine.low %v3256_v43, %v3256_v43 }
 0x257   :  { %v1534_v59 = vmax.f32 %v1510_v9, 0.0  ;;  %v3485_v53 = vadd.f32 %v1403_v46, %v4432_v13  ;;  %v1405_v47 = vpop.f32.mrb[46].mxu0  ;;  %v3799_v46 = vld [vmem:[%s4876_s5 + $0x20] sm:$0xff]  }
 0x258   :  { %v3486_v60 = vadd.f32 %v1405_v47, %v4434_v14  ;;  %v1407_v37 = vpop.f32.mrb[47].mxu0  ;;  %v1581_v14 = vpack.c.bf16 %v4474_v49, %v1573_v20  ;;  %v3762_v49 = vld [vmem:[%s4874_s3 + $0xb0] ss:$8 sps:$4 sm:$0xff]   ;;  %v2317_v51 = vsel %vm1673_vm2, %v3265_v8, 0  ;;  %v3272_v47 = vld [vmem:[%s4877_s4] ss:$0 sm:$0xff] }
 0x259   :  { %v1567_v38 = vmax.f32 %v1533_v10, %v1534_v59  ;;  %v1480_v61 = vmax.f32 %v3484_v11, %v3485_v53  ;;  %v3487_v28 = vadd.f32 %v1407_v37, %v4436_v15  ;;  %v3764_v15 = vld [vmem:[%s4874_s3 + $0xb4] ss:$8 sps:$4 sm:$0xff]   ;;  %v3800_v59 = vld [vmem:[%s4876_s5 + $0x28] sm:$0xff]  }
 0x25a   :  { %v1896_v35 = vld [vmem:[#allocation2 + $0x48] sm:$0xff]  ;;  %v3798_v10 = vld [vmem:[%s4876_s5 + $0x18] sm:$0xff]  }
 0x25b   :  { %1569 = vst.msk [vmem:[#allocation2 + $0x50] sm:$0xff] %vm1538_vm3, %v1567_v38  ;;  %v1511_v13 = vadd.f32 %v4443_v25, %v1480_v61  ;;  %v1481_v62 = vmax.f32 %v3486_v60, %v3487_v28  ;;  %v1900_v6 = vpack.c.bf16 %v1896_v35, %v4575_v58  ;;  %v3266_v58 = vcombine.high %v3256_v43, %v3256_v43  ;;  %v3805_v43 = vld [vmem:[%s4876_s5 + $0x38] sm:$0xff]  }
 0x25d   :  { %v1512_v0 = vadd.f32 %v4443_v25, %v1481_v62  ;;  %3196 = vmatmul.mubr.msk.bf16.vlgmr.msra.gmra.mrb[48].mxu1 %vm1538_vm3, %v1581_v14  ;;  %v1535_v22 = vmax.f32 %v1511_v13, 0.0  ;;  %v1582_v25 = vpack.c.bf16 %v4520_v45, %v4476_v3  ;;  %v3218_v3 = vcombine.high %v3208_v16, %v3208_v16 }
 0x25e   :  { %1975 = vmatpush1.bf16.msra.mxu1 %v3756_v1  ;;  %1858 = vmatprep.mubr.bf16.mxu1 %v4886_v33  ;;  %v3217_v45 = vcombine.low %v3208_v16, %v3208_v16 }
 0x25f   :  { %v1536_v2 = vmax.f32 %v1512_v0, 0.0  ;;  %1976 = vmatprep.subr.bf16.mxu1 %v3761_v12 }
 0x260   :  { %v1969_v18 = vsel %vm1673_vm2, %v3217_v45, 0 }
 0x261   :  { %v1570_v40 = vmax.f32 %v1535_v22, %v1536_v2 }
 0x262   :  { %1977 = vmatpush1.bf16.msra.mxu1 %v3759_v29  ;;  %v2070_v9 = vld [vmem:[#allocation2 + $0x50] sm:$0xff] }
 0x263   :  { %1572 = vst.msk [vmem:[#allocation2 + $0x58] sm:$0xff] %vm1538_vm3, %v1570_v40  ;;  %1978 = vmatprep.subr.bf16.mxu1 %v3764_v15  ;;  %v2074_v52 = vpack.c.bf16 %v2070_v9, %v1896_v35 }
 0x265   :  { %3197 = vmatmul.mubr.msk.bf16.gmra.mrb[52].mxu1 %vm1538_vm3, %v1582_v25 }
 0x266   :  { %1979 = vmatpush1.bf16.msra.mxu1 %v3762_v49  ;;  %1868 = vmatprep.mubr.bf16.mxu1 %v4886_v33 }
 0x267   :  { %1980 = vmatprep.subr.bf16.mxu1 %v3767_v42 }
 0x26a   :  { %1981 = vmatpush1.bf16.msra.mxu1 %v3765_v44 }
 0x26b   :  { %3219 = vmatprep.subr.msk.bf16.mxu1 %vm1673_vm2, %v3218_v3 }
 0x26d   :  { %3198 = vmatmul.mubr.msk.bf16.gmra.mrb[56].mxu1 %vm1538_vm3, %v4627_v54 }
 0x26e   :  { %1878 = vmatprep.mubr.bf16.mxu1 %v4886_v33  ;;  %1983 = vmatpush1.bf16.msra.mxu1 %v1969_v18  ;;  %v3801_v18 = vld [vmem:[%s4876_s5] sm:$0xff]  }
 0x26f   :  { %2148 = vmatprep.subr.bf16.mxu1 %v3772_v55 }
 0x275   :  { %3199 = vmatmul.mubr.msk.bf16.gmra.mrb[60].mxu1 %vm1538_vm3, %v4638_v56 }
 0x276   :  { %2006 = vmatprep.mubr.bf16.mxu1 %v4886_v33 }
 0x27d   :  { %3220 = vmatmul.mubr.msk.bf16.vlgmr.msra.gmra.mrb[48].mxu1 %vm1538_vm3, %v1582_v25 }
 0x27e   :  { %2149 = vmatpush1.bf16.msra.mxu1 %v3770_v30  ;;  %2016 = vmatprep.mubr.bf16.mxu1 %v4886_v33 }
 0x27f   :  { %2150 = vmatprep.subr.bf16.mxu1 %v3775_v48 }
 0x282   :  { %2151 = vmatpush1.bf16.msra.mxu1 %v3773_v39  ;;  %v3802_v39 = vld [vmem:[%s4876_s5 + $0x8] sm:$0xff]  }
 0x283   :  { %2152 = vmatprep.subr.bf16.mxu1 %v3778_v57 }
 0x285   :  { %3221 = vmatmul.mubr.msk.bf16.gmra.mrb[52].mxu1 %vm1538_vm3, %v4627_v54 }
 0x286   :  { %2153 = vmatpush1.bf16.msra.mxu1 %v3776_v17  ;;  %2026 = vmatprep.mubr.bf16.mxu1 %v4886_v33 }
 0x287   :  { %2154 = vmatprep.subr.bf16.mxu1 %v3781_v19 }
 0x28a   :  { %2155 = vmatpush1.bf16.msra.mxu1 %v3779_v34 }
 0x28b   :  { %3243 = vmatprep.subr.msk.bf16.mxu1 %vm1673_vm2, %v3242_v24 }
 0x28d   :  { %3222 = vmatmul.mubr.msk.bf16.gmra.mrb[56].mxu1 %vm1538_vm3, %v4638_v56 }
 0x28e   :  { %2036 = vmatprep.mubr.bf16.mxu1 %v4886_v33  ;;  %2157 = vmatpush1.bf16.msra.mxu1 %v2143_v31 }
 0x28f   :  { %2322 = vmatprep.subr.bf16.mxu1 %v3786_v5  ;;  %v3803_v5 = vld [vmem:[%s4876_s5 + $0x10] sm:$0xff]  }
 0x295   :  { %3223 = vmatmul.mubr.msk.bf16.gmra.mrb[60].mxu1 %vm1538_vm3, %v1900_v6 }
 0x296   :  { %2180 = vmatprep.mubr.bf16.mxu1 %v4886_v33 }
 0x29d   :  { %3244 = vmatmul.mubr.msk.bf16.vlgmr.msra.gmra.mrb[48].mxu1 %vm1538_vm3, %v4528_v23  ;;  %v3795_v23 = vld [vmem:[%s4874_s3 + $0x154] ss:$8 sps:$4 sm:$0xff]  }
 0x29e   :  { %2323 = vmatpush1.bf16.msra.mxu1 %v3784_v50  ;;  %2190 = vmatprep.mubr.bf16.mxu1 %v4886_v33 }
 0x29f   :  { %2324 = vmatprep.subr.bf16.mxu1 %v3789_v32  ;;  %v3804_v32 = vld [vmem:[%s4876_s5 + $0x30] sm:$0xff]  }
 0x2a2   :  { %2325 = vmatpush1.bf16.msra.mxu1 %v3787_v26 }
 0x2a3   :  { %2326 = vmatprep.subr.bf16.mxu1 %v3792_v7 }
 0x2a5   :  { %3245 = vmatmul.mubr.msk.bf16.gmra.mrb[52].mxu1 %vm1538_vm3, %v4558_v63  ;;  %v3827_v63 = vmov 0.0  }
 0x2a6   :  { %2327 = vmatpush1.bf16.msra.mxu1 %v3790_v41  ;;  %2200 = vmatprep.mubr.bf16.mxu1 %v4886_v33 }
 0x2a7   :  { %2328 = vmatprep.subr.bf16.mxu1 %v3795_v23 }
 0x2aa   :  { %2329 = vmatpush1.bf16.msra.mxu1 %v3793_v36  ;;  %v3806_v36 = vld [vmem:[%s4876_s5 + $0x40] sm:$0xff]  }
 0x2ab   :  { %3267 = vmatprep.subr.msk.bf16.mxu1 %vm1673_vm2, %v3266_v58  ;;  %v3807_v58 = vld [vmem:[%s4876_s5 + $0x48] sm:$0xff]  }
 0x2ad   :  { %3246 = vmatmul.mubr.msk.bf16.gmra.mrb[56].mxu1 %vm1538_vm3, %v4580_v27  ;;  %v2244_v27 = vld [vmem:[#allocation2 + $0x58] sm:$0xff] }
 0x2ae   :  { %2210 = vmatprep.mubr.bf16.mxu1 %v4886_v33  ;;  %2331 = vmatpush1.bf16.msra.mxu1 %v2317_v51  ;;  %v2248_v11 = vpack.c.bf16 %v2244_v27, %v2070_v9  ;;  %v3808_v51 = vld [vmem:[%s4876_s5 + $0x50] sm:$0xff]   ;;  %v3809_v9 = vld [vmem:[%s4876_s5 + $0x58] sm:$0xff]   ;;  %v3811_v27 = vld [vmem:[%s4878_s7 + $0x8] sm:$0xff]  }
 0x2af   :  { %3360 = vmatprep.subr.bf16.mxu1 %v3827_v63 }
 0x2b5   :  { %3247 = vmatmul.mubr.msk.bf16.gmra.mrb[60].mxu1 %vm1538_vm3, %v2074_v52 }
 0x2b6   :  { %2354 = vmatprep.mubr.bf16.mxu1 %v4886_v33 }
 0x2bd   :  { %3268 = vmatmul.mubr.msk.bf16.vlgmr.msra.gmra.mrb[48].mxu1 %vm1538_vm3, %v4627_v54 }
 0x2be   :  { %2364 = vmatprep.mubr.bf16.mxu1 %v4886_v33  ;;  %3361 = vmatpush3.bf16.msra.mxu1 %v3798_v10  ;;  %v3810_v10 = vld [vmem:[%s4878_s7] sm:$0xff]  }
 0x2bf   :  { %3362 = vmatprep.subr.bf16.mxu1 %v3827_v63 }
 0x2c2   :  { %3363 = vmatpush3.bf16.msra.mxu1 %v3799_v46  ;;  %v3813_v46 = vld [vmem:[%s4878_s7 + $0x18] sm:$0xff]  }
 0x2c3   :  { %3364 = vmatprep.subr.bf16.mxu1 %v3827_v63 }
 0x2c5   :  { %3269 = vmatmul.mubr.msk.bf16.gmra.mrb[52].mxu1 %vm1538_vm3, %v4638_v56 }
 0x2c6   :  { %2374 = vmatprep.mubr.bf16.mxu1 %v4886_v33  ;;  %3365 = vmatpush3.bf16.msra.mxu1 %v3800_v59  ;;  %v3814_v59 = vld [vmem:[%s4878_s7 + $0x20] sm:$0xff]  }
 0x2c7   :  { %3370 = vmatprep.subr.bf16.mxu1 %v3827_v63 }
 0x2cd   :  { %3270 = vmatmul.mubr.msk.bf16.gmra.mrb[56].mxu1 %vm1538_vm3, %v1900_v6 }
 0x2ce   :  { %2384 = vmatprep.mubr.bf16.mxu1 %v4886_v33 }
 0x2d5   :  { %3271 = vmatmul.mubr.msk.bf16.gmra.mrb[60].mxu1 %vm1538_vm3, %v2248_v11  ;;  %v3812_v11 = vld [vmem:[%s4878_s7 + $0x10] sm:$0xff]  }
 0x2d6   :  { %3366 = vmatprep.mubr.msk.bf16.mxu1 %vm3828_vm4, %v3827_v63 }
 0x390   :  { %v2356_v33 = vpop.f32.mrb[48].mxu1 }
 0x391   :  { %v2358_v53 = vpop.f32.mrb[49].mxu1 }
 0x392   :  { %v2411_v60 = vmax.f32 %v2356_v33, %v2358_v53  ;;  %v2360_v37 = vpop.f32.mrb[50].mxu1  ;;  %v3815_v33 = vld [vmem:[%s4878_s7 + $0x28] sm:$0xff]   ;;  %v3816_v53 = vld [vmem:[%s4878_s7 + $0x30] sm:$0xff]  }
 0x393   :  { %v2362_v1 = vpop.f32.mrb[51].mxu1 }
 0x394   :  { %v2426_v38 = vadd.f32 %v3272_v47, %v2411_v60  ;;  %v2412_v61 = vmax.f32 %v2360_v37, %v2362_v1 }
 0x396   :  { %v2427_v28 = vadd.f32 %v3272_v47, %v2412_v61  ;;  %v2434_v12 = vmax.f32 %v2426_v38, 0.0 }
 0x398   :  { %v2435_v20 = vmax.f32 %v2427_v28, 0.0  ;;  %v2366_v13 = vpop.f32.mrb[52].mxu1 }
 0x399   :  { %v2368_v62 = vpop.f32.mrb[53].mxu1 }
 0x39a   :  { %v2442_v14 = vmax.f32 %v2434_v12, %v2435_v20  ;;  %v2413_v29 = vmax.f32 %v2366_v13, %v2368_v62  ;;  %v2370_v0 = vpop.f32.mrb[54].mxu1 }
 0x39b   :  { %v2372_v15 = vpop.f32.mrb[55].mxu1 }
 0x39c   :  { %v2428_v22 = vadd.f32 %v3272_v47, %v2413_v29  ;;  %v2414_v2 = vmax.f32 %v2370_v0, %v2372_v15  ;;  %v2443_v26 = vpack.c.bf16 %v2442_v14, %v2442_v14 }
 0x39e   :  { %v2429_v40 = vadd.f32 %v3272_v47, %v2414_v2  ;;  %v2436_v49 = vmax.f32 %v2428_v22, 0.0  ;;  %v3307_v2 = vld [vmem:[%s4880_s6] ss:$0 sm:$0xff] }
 0x3a0   :  { %v2437_v25 = vmax.f32 %v2429_v40, 0.0  ;;  %v2376_v42 = vpop.f32.mrb[56].mxu1 }
 0x3a1   :  { %v2378_v16 = vpop.f32.mrb[57].mxu1 }
 0x3a2   :  { %v2450_v44 = vmax.f32 %v2436_v49, %v2437_v25  ;;  %v2415_v3 = vmax.f32 %v2376_v42, %v2378_v16  ;;  %v2380_v45 = vpop.f32.mrb[58].mxu1 }
 0x3a3   :  { %v2382_v54 = vpop.f32.mrb[59].mxu1 }
 0x3a4   :  { %v2451_v55 = vpack.c.bf16 %v2450_v44, %v2450_v44  ;;  %v2430_v56 = vadd.f32 %v3272_v47, %v2415_v3  ;;  %v2416_v30 = vmax.f32 %v2380_v45, %v2382_v54  ;;  %v3818_v3 = vld [vmem:[%s4879_s9] sm:$0xff]   ;;  %v3819_v54 = vld [vmem:[%s4879_s9 + $0x8] sm:$0xff]  }
 0x3a6   :  { %v2431_v48 = vadd.f32 %v3272_v47, %v2416_v30  ;;  %3367 = vmatmul.mubr.msk.bf16.vlgmr.msra.gmra.mrb[64].mxu1 %vm2477_vm5, %v2451_v55  ;;  %v2438_v57 = vmax.f32 %v2430_v56, 0.0  ;;  %v3821_v55 = vld [vmem:[%s4879_s9 + $0x18] sm:$0xff]   ;;  %v3822_v56 = vld [vmem:[%s4879_s9 + $0x20] sm:$0xff]   ;;  %v3823_v30 = vld [vmem:[%s4879_s9 + $0x28] sm:$0xff]  }
 0x3a7   :  { %3371 = vmatpush3.bf16.msra.mxu1 %v3801_v18  ;;  %3376 = vmatprep.mubr.msk.bf16.mxu1 %vm3828_vm4, %v3827_v63  ;;  %v3820_v18 = vld [vmem:[%s4879_s9 + $0x10] sm:$0xff]  }
 0x3a8   :  { %v2439_v17 = vmax.f32 %v2431_v48, 0.0  ;;  %v2386_v19 = vpop.f32.mrb[60].mxu1  ;;  %3372 = vmatprep.subr.bf16.mxu1 %v3827_v63  ;;  %v3824_v48 = vld [vmem:[%s4879_s9 + $0x30] sm:$0xff]  }
 0x3a9   :  { %v2388_v4 = vpop.f32.mrb[61].mxu1 }
 0x3aa   :  { %v2582_v34 = vmax.f32 %v2438_v57, %v2439_v17  ;;  %v2417_v24 = vmax.f32 %v2386_v19, %v2388_v4  ;;  %v2390_v21 = vpop.f32.mrb[62].mxu1  ;;  %v3308_v57 = vld [vmem:[%s4881_s8] ss:$0 sm:$0xff] }
 0x3ab   :  { %3373 = vmatpush3.bf16.msra.mxu1 %v3802_v39  ;;  %v2392_v31 = vpop.f32.mrb[63].mxu1  ;;  %v3825_v39 = vld [vmem:[%s4879_s9 + $0x38] sm:$0xff]  }
 0x3ac   :  { %v2432_v35 = vadd.f32 %v3272_v47, %v2417_v24  ;;  %v2418_v6 = vmax.f32 %v2390_v21, %v2392_v31  ;;  %3374 = vmatprep.subr.bf16.mxu1 %v3827_v63  ;;  %v2583_v8 = vpack.c.bf16 %v2582_v34, %v2582_v34 }
 0x3ae   :  { %v2433_v50 = vadd.f32 %v3272_v47, %v2418_v6  ;;  %v2440_v7 = vmax.f32 %v2432_v35, 0.0  ;;  %v3817_v47 = vld [vmem:[%s4878_s7 + $0x38] sm:$0xff]  }
 0x3af   :  { %3375 = vmatpush3.bf16.msra.mxu1 %v3803_v5 }
 0x3b0   :  { %v2441_v41 = vmax.f32 %v2433_v50, 0.0  ;;  %3380 = vmatprep.subr.bf16.mxu1 %v3827_v63 }
 0x3b2   :  { %v2653_v23 = vmax.f32 %v2440_v7, %v2441_v41  ;;  %3377 = vmatmul.mubr.msk.bf16.vlgmr.msra.gmra.mrb[68].mxu1 %vm2477_vm5, %v2443_v26 }
 0x3b3   :  { %3381 = vmatpush3.bf16.msra.mxu1 %v3804_v32  ;;  %3386 = vmatprep.mubr.msk.bf16.mxu1 %vm3828_vm4, %v3827_v63 }
 0x3b4   :  { %3382 = vmatprep.subr.bf16.mxu1 %v3827_v63  ;;  %v2654_v52 = vpack.c.bf16 %v2653_v23, %v2653_v23 }
 0x3b7   :  { %3383 = vmatpush3.bf16.msra.mxu1 %v3805_v43 }
 0x3b8   :  { %3384 = vmatprep.subr.bf16.mxu1 %v3827_v63 }
 0x3bb   :  { %3385 = vmatpush3.bf16.msra.mxu1 %v3806_v36 }
 0x3bc   :  { %3390 = vmatprep.subr.bf16.mxu1 %v3827_v63 }
 0x3be   :  { %3387 = vmatmul.mubr.msk.bf16.vlgmr.msra.gmra.mrb[72].mxu1 %vm2477_vm5, %v2583_v8 }
 0x3bf   :  { %3391 = vmatpush3.bf16.msra.mxu1 %v3807_v58  ;;  %3396 = vmatprep.mubr.msk.bf16.mxu1 %vm3828_vm4, %v3827_v63 }
 0x3c0   :  { %3392 = vmatprep.subr.bf16.mxu1 %v3827_v63 }
 0x3c3   :  { %3393 = vmatpush3.bf16.msra.mxu1 %v3808_v51 }
 0x3c4   :  { %3394 = vmatprep.subr.bf16.mxu1 %v3827_v63 }
 0x3c7   :  { %3395 = vmatpush3.bf16.msra.mxu1 %v3809_v9 }
 0x3c8   :  { %3400 = vmatprep.subr.bf16.mxu1 %v3827_v63 }
 0x3ca   :  { %3397 = vmatmul.mubr.msk.bf16.vlgmr.msra.gmra.mrb[76].mxu1 %vm2477_vm5, %v2654_v52 }
 0x3cb   :  { %3416 = vmatprep.mubr.msk.bf16.mxu1 %vm3828_vm4, %v3827_v63  ;;  %3401 = vmatpush3.bf16.msra.mxu1 %v3810_v10 }
 0x3cc   :  { %3402 = vmatprep.subr.bf16.mxu1 %v3827_v63 }
 0x3cf   :  { %3403 = vmatpush3.bf16.msra.mxu1 %v3811_v27 }
 0x3d0   :  { %3404 = vmatprep.subr.bf16.mxu1 %v3827_v63 }
 0x3d3   :  { %3405 = vmatpush3.bf16.msra.mxu1 %v3812_v11 }
 0x3d4   :  { %3406 = vmatprep.subr.bf16.mxu1 %v3827_v63 }
 0x3d7   :  { %3407 = vmatpush3.bf16.msra.mxu1 %v3813_v46 }
 0x3d8   :  { %3408 = vmatprep.subr.bf16.mxu1 %v3827_v63 }
 0x3db   :  { %3409 = vmatpush3.bf16.msra.mxu1 %v3814_v59 }
 0x3dc   :  { %3410 = vmatprep.subr.bf16.mxu1 %v3827_v63 }
 0x3df   :  { %3411 = vmatpush3.bf16.msra.mxu1 %v3815_v33 }
 0x3e0   :  { %3412 = vmatprep.subr.bf16.mxu1 %v3827_v63 }
 0x3e3   :  { %3413 = vmatpush3.bf16.msra.mxu1 %v3816_v53 }
 0x3e4   :  { %3414 = vmatprep.subr.bf16.mxu1 %v3827_v63 }
 0x3e7   :  { %3415 = vmatpush3.bf16.msra.mxu1 %v3817_v47 }
 0x3e8   :  { %3420 = vmatprep.subr.bf16.mxu1 %v3827_v63 }
 0x479   :  { %v2515_v60 = vpop.f32.mrb[64].mxu1 }
 0x47a   :  { %v3368_v37 = vpop.f32.mrb[65].mxu1 }
 0x47b   :  { %v2518_v1 = vpop.f32.mrb[66].mxu1 }
 0x47c   :  { %v3369_v38 = vpop.f32.mrb[67].mxu1 }
 0x485   :  { %v2576_v61 = vpop.f32.mrb[68].mxu1 }
 0x486   :  { %v2577_v28 = vadd.f32 %v2576_v61, %v2515_v60  ;;  %v3378_v12 = vpop.f32.mrb[69].mxu1 }
 0x487   :  { %v2579_v20 = vpop.f32.mrb[70].mxu1 }
 0x488   :  { %v3379_v13 = vpop.f32.mrb[71].mxu1 }
 0x491   :  { %v2646_v62 = vpop.f32.mrb[72].mxu1 }
 0x492   :  { %v2652_v14 = vadd.f32 %v2646_v62, %v2577_v28  ;;  %v3388_v29 = vpop.f32.mrb[73].mxu1 }
 0x493   :  { %v2649_v0 = vpop.f32.mrb[74].mxu1 }
 0x494   :  { %v3389_v15 = vpop.f32.mrb[75].mxu1 }
 0x49d   :  { %v2717_v22 = vpop.f32.mrb[76].mxu1 }
 0x49e   :  { %v2723_v40 = vadd.f32 %v2717_v22, %v2652_v14  ;;  %v3398_v49 = vpop.f32.mrb[77].mxu1 }
 0x49f   :  { %v2720_v25 = vpop.f32.mrb[78].mxu1 }
 0x4a0   :  { %v2731_v42 = vadd.f32 %v3307_v2, %v2723_v40  ;;  %v3399_v16 = vpop.f32.mrb[79].mxu1 }
 0x4a2   :  { %v2732_v44 = vmax.f32 %v2731_v42, 0.0 }
 0x4a4   :  { %v2733_v45 = vpack.c.bf16 %v2732_v44, %v2732_v44 }
 0x4a6   :  { %3417 = vmatmul.mubr.bf16.vlgmr.msra.gmra.mrb[80].mxu1 %v2733_v45 }
 0x4a7   :  { %3421 = vmatpush3.bf16.msra.mxu1 %v3818_v3  ;;  %3436 = vmatprep.mubr.msk.bf16.mxu1 %vm3828_vm4, %v3827_v63 }
 0x4a8   :  { %3422 = vmatprep.subr.bf16.mxu1 %v3827_v63 }
 0x4ab   :  { %3423 = vmatpush3.bf16.msra.mxu1 %v3819_v54 }
 0x4ac   :  { %3424 = vmatprep.subr.bf16.mxu1 %v3827_v63 }
 0x4af   :  { %3425 = vmatpush3.bf16.msra.mxu1 %v3820_v18 }
 0x4b0   :  { %3426 = vmatprep.subr.bf16.mxu1 %v3827_v63 }
 0x4b3   :  { %3427 = vmatpush3.bf16.msra.mxu1 %v3821_v55 }
 0x4b4   :  { %3428 = vmatprep.subr.bf16.mxu1 %v3827_v63 }
 0x4b7   :  { %3429 = vmatpush3.bf16.msra.mxu1 %v3822_v56 }
 0x4b8   :  { %3430 = vmatprep.subr.bf16.mxu1 %v3827_v63 }
 0x4bb   :  { %3431 = vmatpush3.bf16.msra.mxu1 %v3823_v30 }
 0x4bc   :  { %3432 = vmatprep.subr.bf16.mxu1 %v3827_v63 }
 0x4bf   :  { %3433 = vmatpush3.bf16.msra.mxu1 %v3824_v48 }
 0x4c0   :  { %3434 = vmatprep.subr.bf16.mxu1 %v3827_v63  ;;  %v3317_v63 = vld [vmem:[%s4882_s10] ss:$0 sm:$0xff] }
 0x4c3   :  { %3435 = vmatpush3.bf16.msra.mxu1 %v3825_v39 }
 0x579   :  { %v2839_v17 = vpop.f32.mrb[80].mxu1 }
 0x57a   :  { %v2840_v19 = vadd.f32 %v3308_v57, %v2839_v17  ;;  %v3418_v4 = vpop.f32.mrb[81].mxu1 }
 0x57b   :  { %v2842_v34 = vpop.f32.mrb[82].mxu1 }
 0x57c   :  { %v2845_v24 = vmax.f32 %v2840_v19, 0.0  ;;  %v3419_v21 = vpop.f32.mrb[83].mxu1 }
 0x57e   :  { %v2846_v31 = vpack.c.bf16 %v2845_v24, %v2845_v24 }
 0x580   :  { %3437 = vmatmul.mubr.bf16.vlgmr.msra.gmra.mrb[84].mxu1 %v2846_v31 }
 0x653   :  { %v2952_v5 = vpop.f32.mrb[84].mxu1 }
 0x654   :  { %v2953_v35 = vadd.f32 %v3317_v63, %v2952_v5  ;;  %v3438_v6 = vpop.f32.mrb[85].mxu1 }
 0x655   :  { %v2955_v50 = vpop.f32.mrb[86].mxu1 }
 0x656   :  { %2958 = vst [vmem:[%s4883_s11] sm:$0xff] %v2953_v35  ;;  %v3439_v32 = vpop.f32.mrb[87].mxu1 }

</bundles_post_ra>
